<compile_context>
chip_gen: v7x
topology: tpu7x:2x2x1
jax: 0.10.0
libtpu: 0.0.40
codegen_flags: <defaults>
</compile_context>

<pallas_src>
import functools

import numpy as np
import jax
import jax.numpy as jnp
from jax.experimental import pallas as pl
from jax.experimental.pallas import tpu as pltpu


def _round_up(x, m):
    return (x + m - 1) // m * m


def _vmem_limit_bytes():
    """Generation-aware VMEM request: full-ish on v5e/v6e (128 MiB physical),
    ~48 MiB on v7x (64 MiB physical) so the compiler keeps headroom."""
    cap = 128 * 1024 * 1024
    try:
        cap = int(pltpu.get_tpu_info().vmem_capacity_bytes)
    except Exception:
        pass
    return max(32 * 1024 * 1024, min(cap - 16 * 1024 * 1024, 64 * 1024 * 1024))


# ----------------------------------------------------------------------------
# Fused Pallas kernel: the whole encoder stack.  Grid = (batch, block).
# ----------------------------------------------------------------------------
def _encoder_stack_kernel(x_ref, wqkv_ref, wout_ref,
                          ln1w_ref, ln1b_ref,
                          w1_ref, b1_ref, w2_ref, b2_ref,
                          ln2w_ref, ln2b_ref,
                          o_ref,
                          act_ref, qkv_ref, attn_ref,
                          *, T, Tp, E, H):
    D = E // H
    eps = 1e-5
    inv_sqrt2 = 0.7071067811865476
    l = pl.program_id(1)

    # At the first block of this batch element, load the activation carry.
    @pl.when(l == 0)
    def _():
        act_ref[...] = x_ref[0].astype(jnp.float32)

    x = act_ref[...]                                            # (Tp, E) f32

    # ---- QKV projection (bf16 MXU, f32 accumulate), cast to bf16 ONCE -------
    # sqrt(head_dim) attention scale is pre-folded into the q weight columns.
    qkv_ref[...] = jnp.dot(x.astype(jnp.bfloat16), wqkv_ref[0],
                           preferred_element_type=jnp.float32
                           ).astype(jnp.bfloat16)               # (Tp, 3E) bf16

    if Tp > T:  # static: key mask for padded sequence positions
        key_valid = jax.lax.broadcasted_iota(jnp.int32, (Tp, Tp), 1) < T

    # ---- multi-head self attention -------------------------------------------
    # Per-head context is folded directly into the output projection so every
    # store is a lane-dense (Tp, E) accumulate (no 64-lane masked ctx stores).
    for h in range(H):
        qh = qkv_ref[:, 0 * E + h * D: 0 * E + (h + 1) * D]     # (Tp, D) bf16
        kh = qkv_ref[:, 1 * E + h * D: 1 * E + (h + 1) * D]
        vh = qkv_ref[:, 2 * E + h * D: 2 * E + (h + 1) * D]

        energy = jax.lax.dot_general(                            # q @ k^T
            qh, kh, dimension_numbers=(((1,), (1,)), ((), ())),
            preferred_element_type=jnp.float32)                  # (Tp, Tp) f32
        if Tp > T:
            energy = jnp.where(key_valid, energy, -jnp.inf)

        # softmax in f32; divide -> EUP approx reciprocal.
        energy = energy - jnp.max(energy, axis=-1, keepdims=True)
        p = jnp.exp(energy)
        inv_den = pl.reciprocal(jnp.sum(p, axis=-1, keepdims=True), approx=True)
        probs = (p * inv_den).astype(jnp.bfloat16)

        ctx_h = jnp.dot(probs, vh, preferred_element_type=jnp.float32)   # (Tp, D)
        contrib = jnp.dot(ctx_h.astype(jnp.bfloat16), wout_ref[0, h],
                          preferred_element_type=jnp.float32)            # (Tp, E)
        if h == 0:
            attn_ref[...] = contrib
        else:
            attn_ref[...] += contrib

    # Dropout(0.1) -> identity (inference).  Residual + LayerNorm 1 (f32 stats).
    x = x + attn_ref[...]
    mu = jnp.mean(x, axis=-1, keepdims=True)
    var = jnp.mean((x - mu) ** 2, axis=-1, keepdims=True)
    x = (x - mu) * jax.lax.rsqrt(var + eps) * ln1w_ref[0] + ln1b_ref[0]

    # ---- MLP: Linear -> GELU(exact erf) -> Linear (dropouts identity) --------
    h1 = jnp.dot(x.astype(jnp.bfloat16), w1_ref[0],
                 preferred_element_type=jnp.float32) + b1_ref[0]
    h1 = 0.5 * h1 * (1.0 + jax.lax.erf(h1 * inv_sqrt2))
    mlp = jnp.dot(h1.astype(jnp.bfloat16), w2_ref[0],
                  preferred_element_type=jnp.float32) + b2_ref[0]
    x = x + mlp

    # ---- LayerNorm 2 (f32 stats) ----------------------------------------------
    mu = jnp.mean(x, axis=-1, keepdims=True)
    var = jnp.mean((x - mu) ** 2, axis=-1, keepdims=True)
    x = (x - mu) * jax.lax.rsqrt(var + eps) * ln2w_ref[0] + ln2b_ref[0]

    act_ref[...] = x                                             # carry to block l+1

    @pl.when(l == pl.num_programs(1) - 1)
    def _():
        o_ref[0] = x.astype(o_ref.dtype)


# ----------------------------------------------------------------------------
# Wrapper: one fused pallas_call over (batch, block)
# ----------------------------------------------------------------------------
def transformer_encoder(x, params, head_num):
    B, T, E = x.shape
    L = params["wqkv"].shape[0]

    # Pad the sequence dim to a lane/MXU friendly multiple (ViT: 197 -> 256).
    Tp = _round_up(T, 128 if T >= 128 else 8)
    if Tp != T:
        x = jnp.pad(x, ((0, 0), (0, Tp - T), (0, 0)))

    kernel = functools.partial(_encoder_stack_kernel, T=T, Tp=Tp, E=E, H=head_num)

    def batch_spec():
        return pl.BlockSpec((1, Tp, E), lambda b, l: (b, 0, 0))

    def block_weight_spec(a):
        nd = a.ndim

        def imap(b, l):
            return (l,) + (0,) * (nd - 1)

        return pl.BlockSpec((1,) + a.shape[1:], imap)

    args = (x, params["wqkv"], params["wout"],
            params["ln1w"], params["ln1b"],
            params["w1"], params["b1"], params["w2"], params["b2"],
            params["ln2w"], params["ln2b"])

    in_specs = [batch_spec()] + [block_weight_spec(a) for a in args[1:]]
    out_spec = batch_spec()

    out = pl.pallas_call(
        kernel,
        out_shape=jax.ShapeDtypeStruct((B, Tp, E), x.dtype),
        grid_spec=pltpu.PrefetchScalarGridSpec(
            num_scalar_prefetch=0,
            grid=(B, L),                         # block axis innermost: weight prefetch
            in_specs=in_specs,
            out_specs=out_spec,
            scratch_shapes=[
                pltpu.VMEM((Tp, E), jnp.float32),        # activation carry
                pltpu.VMEM((Tp, 3 * E), jnp.bfloat16),   # qkv (bf16, cast once)
                pltpu.VMEM((Tp, E), jnp.float32),        # attention-out accumulator
            ],
        ),
        compiler_params=pltpu.CompilerParams(
            dimension_semantics=("parallel", "arbitrary"),   # megacore on batch
            vmem_limit_bytes=_vmem_limit_bytes(),
        ),
    )(*args)

    return out[:, :T, :] if Tp != T else out


# ----------------------------------------------------------------------------
# Parameters: canonical (PyTorch layout, f32) and kernel-ready (bf16, permuted)
# ----------------------------------------------------------------------------
def init_canonical_block_params(key, E, H, M):
    ks = jax.random.split(key, 8)
    return dict(
        qkv_w=jax.random.normal(ks[0], (3 * E, E), jnp.float32) * 0.05,  # Linear(E,3E,bias=False)
        out_w=jax.random.normal(ks[1], (E, E), jnp.float32) * 0.05,      # Linear(E,E,bias=False)
        fc1_w=jax.random.normal(ks[2], (M, E), jnp.float32) * 0.05,
        fc1_b=jax.random.normal(ks[3], (M,), jnp.float32) * 0.01,
        fc2_w=jax.random.normal(ks[4], (E, M), jnp.float32) * 0.05,
        fc2_b=jax.random.normal(ks[5], (E,), jnp.float32) * 0.01,
        ln1_w=1.0 + 0.01 * jax.random.normal(ks[6], (E,), jnp.float32),
        ln1_b=jnp.zeros((E,), jnp.float32),
        ln2_w=1.0 + 0.01 * jax.random.normal(ks[7], (E,), jnp.float32),
        ln2_b=jnp.zeros((E,), jnp.float32),
    )


def prepare_kernel_params(p, H):
    """PyTorch-layout params -> kernel layout (transposed, head-permuted,
    q-scale folded, matmul weights cast to bf16)."""
    E = p["out_w"].shape[0]
    D = E // H

    wqkv = jnp.asarray(p["qkv_w"]).T                  # (E, 3E); old col f = d*3H + k*H + h
    # new col = k*E + h*D + d  <-  old col = d*3H + k*H + h   (einops 'b t (d k h)')
    perm = np.empty(3 * E, dtype=np.int32)
    for d_ in range(D):
        for k_ in range(3):
            for h_ in range(H):
                perm[k_ * E + h_ * D + d_] = d_ * 3 * H + k_ * H + h_
    wqkv = wqkv[:, perm]
    # Reference MULTIPLIES energy by sqrt(head_dim); fold it into the q columns.
    scale = jnp.float32(D) ** 0.5
    wqkv = wqkv.at[:, :E].multiply(scale)

    wout = jnp.asarray(p["out_w"]).T.reshape(H, D, E)  # input feature (h d) -> (H, D, E)

    return dict(
        wqkv=wqkv.astype(jnp.bfloat16),
        wout=wout.astype(jnp.bfloat16),
        w1=jnp.asarray(p["fc1_w"]).T.astype(jnp.bfloat16),        # (E, M)
        b1=jnp.asarray(p["fc1_b"]).reshape(1, -1).astype(jnp.float32),
        w2=jnp.asarray(p["fc2_w"]).T.astype(jnp.bfloat16),        # (M, E)
        b2=jnp.asarray(p["fc2_b"]).reshape(1, -1).astype(jnp.float32),
        ln1w=jnp.asarray(p["ln1_w"]).reshape(1, -1).astype(jnp.float32),
        ln1b=jnp.asarray(p["ln1_b"]).reshape(1, -1).astype(jnp.float32),
        ln2w=jnp.asarray(p["ln2_w"]).reshape(1, -1).astype(jnp.float32),
        ln2b=jnp.asarray(p["ln2_b"]).reshape(1, -1).astype(jnp.float32),
    )


def stack_block_params(kparams_list):
    """Stack per-block kernel params along a leading block axis."""
    return {k: jnp.stack([kp[k] for kp in kparams_list], axis=0)
            for k in kparams_list[0]}


# ----------------------------------------------------------------------------
# Pure-JAX f32 reference of the exact PyTorch module math (sanity check)
# ----------------------------------------------------------------------------
def _layernorm(x, w, b, eps=1e-5):
    mu = jnp.mean(x, axis=-1, keepdims=True)
    var = jnp.mean((x - mu) ** 2, axis=-1, keepdims=True)
    return (x - mu) * jax.lax.rsqrt(var + eps) * w + b


def _block_ref(x, p, H):
    B, T, E = x.shape
    D = E // H
    dk = D ** 0.5
    qkv = jnp.einsum("bte,fe->btf", x, p["qkv_w"])            # (B,T,3E), f = (d k h)
    qkv = qkv.reshape(B, T, D, 3, H)
    q = jnp.transpose(qkv[:, :, :, 0, :], (0, 3, 1, 2))       # b h t d
    k = jnp.transpose(qkv[:, :, :, 1, :], (0, 3, 1, 2))
    v = jnp.transpose(qkv[:, :, :, 2, :], (0, 3, 1, 2))
    energy = jnp.einsum("bhid,bhjd->bhij", q, k) * dk         # reference MULTIPLIES by dk
    attn = jax.nn.softmax(energy, axis=-1)
    ctx = jnp.einsum("bhij,bhjd->bhid", attn, v)
    ctx = jnp.transpose(ctx, (0, 2, 1, 3)).reshape(B, T, E)   # b t (h d)
    x = x + jnp.einsum("bte,fe->btf", ctx, p["out_w"])
    x = _layernorm(x, p["ln1_w"], p["ln1_b"])
    h1 = jnp.einsum("bte,me->btm", x, p["fc1_w"]) + p["fc1_b"]
    h1 = 0.5 * h1 * (1.0 + jax.lax.erf(h1 * 0.7071067811865476))
    x = x + jnp.einsum("btm,em->bte", h1, p["fc2_w"]) + p["fc2_b"]
    x = _layernorm(x, p["ln2_w"], p["ln2_b"])
    return x


# ----------------------------------------------------------------------------
if __name__ == "__main__":
    B, T, E, H, M = 2, 8, 32, 4, 64
    BLOCK_NUM = 2   # small for the demo; the module default is 12

    key = jax.random.PRNGKey(0)
    key, xk = jax.random.split(key)
    x = jax.random.normal(xk, (B, T, E), jnp.float32)

    block_keys = jax.random.split(key, BLOCK_NUM)
    canon_params = [init_canonical_block_params(k, E, H, M) for k in block_keys]
    kernel_params = stack_block_params(
        [prepare_kernel_params(p, H) for p in canon_params])

    out = transformer_encoder(x, kernel_params, H)
    out = jax.block_until_ready(out)

    # sanity check against exact PyTorch-module math in plain f32 JAX
    ref = x
    for p in canon_params:
        ref = _block_ref(ref, p, H)
    assert out.shape == (B, T, E)
    # bf16 matmuls (f32 accumulate) + approx reciprocal => loose-but-meaningful tolerance
    np.testing.assert_allclose(np.asarray(out), np.asarray(ref), rtol=5e-2, atol=5e-2)

    print("KERNEL_OK")
</pallas_src>

<mosaic_0001>
module attributes {stable_mosaic.version = 11 : i64} {
  func.func @_encoder_stack_kernel(%arg0: i32, %arg1: i32, %arg2: memref<1x8x32xf32, #tpu.memory_space<vmem>>, %arg3: memref<1x32x96xbf16, #tpu.memory_space<vmem>>, %arg4: memref<1x4x8x32xbf16, #tpu.memory_space<vmem>>, %arg5: memref<1x1x32xf32, #tpu.memory_space<vmem>>, %arg6: memref<1x1x32xf32, #tpu.memory_space<vmem>>, %arg7: memref<1x32x64xbf16, #tpu.memory_space<vmem>>, %arg8: memref<1x1x64xf32, #tpu.memory_space<vmem>>, %arg9: memref<1x64x32xbf16, #tpu.memory_space<vmem>>, %arg10: memref<1x1x32xf32, #tpu.memory_space<vmem>>, %arg11: memref<1x1x32xf32, #tpu.memory_space<vmem>>, %arg12: memref<1x1x32xf32, #tpu.memory_space<vmem>>, %arg13: memref<1x8x32xf32, #tpu.memory_space<vmem>>, %arg14: memref<8x32xf32, #tpu.memory_space<vmem>>, %arg15: memref<8x96xbf16, #tpu.memory_space<vmem>>, %arg16: memref<8x32xf32, #tpu.memory_space<vmem>>) attributes {dimension_semantics = [#tpu.dimension_semantics<parallel>, #tpu.dimension_semantics<arbitrary>], iteration_bounds = array<i64: 2, 2>, scalar_prefetch = 0 : i64, scratch_operands = 3 : i64, tpu.core_type = #tpu.core_type<tc>, window_params = [{transform_indices = @transform_0, window_bounds = array<i64: 1, 8, 32>}, {transform_indices = @transform_1, window_bounds = array<i64: 1, 32, 96>}, {transform_indices = @transform_2, window_bounds = array<i64: 1, 4, 8, 32>}, {transform_indices = @transform_3, window_bounds = array<i64: 1, 1, 32>}, {transform_indices = @transform_4, window_bounds = array<i64: 1, 1, 32>}, {transform_indices = @transform_5, window_bounds = array<i64: 1, 32, 64>}, {transform_indices = @transform_6, window_bounds = array<i64: 1, 1, 64>}, {transform_indices = @transform_7, window_bounds = array<i64: 1, 64, 32>}, {transform_indices = @transform_8, window_bounds = array<i64: 1, 1, 32>}, {transform_indices = @transform_9, window_bounds = array<i64: 1, 1, 32>}, {transform_indices = @transform_10, window_bounds = array<i64: 1, 1, 32>}, {transform_indices = @transform_11, window_bounds = array<i64: 1, 8, 32>}]} {
    %c0_i32 = arith.constant 0 : i32
    %0 = arith.cmpi eq, %arg1, %c0_i32 : i32
    %1 = arith.extui %0 : i1 to i32
    %c0_i32_0 = arith.constant 0 : i32
    %2 = arith.cmpi ne, %1, %c0_i32_0 : i32
    scf.if %2 {
      %c0_111 = arith.constant 0 : index
      %c0_112 = arith.constant 0 : index
      %c0_113 = arith.constant 0 : index
      %183 = vector.load %arg2[%c0_111, %c0_112, %c0_113] : memref<1x8x32xf32, #tpu.memory_space<vmem>>, vector<1x8x32xf32>
      %184 = vector.shape_cast %183 : vector<1x8x32xf32> to vector<8x32xf32>
      %c0_114 = arith.constant 0 : index
      %c0_115 = arith.constant 0 : index
      %185 = vector.load %arg14[%c0_114, %c0_115] : memref<8x32xf32, #tpu.memory_space<vmem>>, vector<8x32xf32>
      tpu.vector_store %arg14[%c0_114, %c0_115], %184 {strides = array<i32>} : memref<8x32xf32, #tpu.memory_space<vmem>>, vector<8x32xf32>,
    } else {
    }
    %c0 = arith.constant 0 : index
    %c0_1 = arith.constant 0 : index
    %3 = vector.load %arg14[%c0, %c0_1] : memref<8x32xf32, #tpu.memory_space<vmem>>, vector<8x32xf32>
    %4 = arith.truncf %3 : vector<8x32xf32> to vector<8x32xbf16>
    %c0_2 = arith.constant 0 : index
    %c0_3 = arith.constant 0 : index
    %c0_4 = arith.constant 0 : index
    %5 = vector.load %arg3[%c0_2, %c0_3, %c0_4] : memref<1x32x96xbf16, #tpu.memory_space<vmem>>, vector<1x32x96xbf16>
    %6 = vector.shape_cast %5 : vector<1x32x96xbf16> to vector<32x96xbf16>
    %cst = arith.constant dense<0.000000e+00> : vector<8x96xf32>
    %7 = tpu.matmul %4, %6, %cst {dimension_numbers = #tpu.dot_dimension_numbers<[1], [0], [0], [1], [0, 0, 1, 1], [], []>} : vector<8x32xbf16>, vector<32x96xbf16>, vector<8x96xf32> -> vector<8x96xf32>
    %8 = arith.truncf %7 : vector<8x96xf32> to vector<8x96xbf16>
    %c0_5 = arith.constant 0 : index
    %c0_6 = arith.constant 0 : index
    %9 = vector.load %arg15[%c0_5, %c0_6] : memref<8x96xbf16, #tpu.memory_space<vmem>>, vector<8x96xbf16>
    tpu.vector_store %arg15[%c0_5, %c0_6], %8 {strides = array<i32>} : memref<8x96xbf16, #tpu.memory_space<vmem>>, vector<8x96xbf16>,
    %c0_7 = arith.constant 0 : index
    %c0_8 = arith.constant 0 : index
    %10 = vector.load %arg15[%c0_7, %c0_8] : memref<8x96xbf16, #tpu.memory_space<vmem>>, vector<8x8xbf16>
    %c0_9 = arith.constant 0 : index
    %c32 = arith.constant 32 : index
    %11 = vector.load %arg15[%c0_9, %c32] : memref<8x96xbf16, #tpu.memory_space<vmem>>, vector<8x8xbf16>
    %c0_10 = arith.constant 0 : index
    %c64 = arith.constant 64 : index
    %12 = vector.load %arg15[%c0_10, %c64] : memref<8x96xbf16, #tpu.memory_space<vmem>>, vector<8x8xbf16>
    %cst_11 = arith.constant dense<0.000000e+00> : vector<8x8xf32>
    %13 = tpu.matmul %10, %11, %cst_11 {dimension_numbers = #tpu.dot_dimension_numbers<[1], [1], [0], [0], [0, 0, 1, 0], [], []>} : vector<8x8xbf16>, vector<8x8xbf16>, vector<8x8xf32> -> vector<8x8xf32>
    %cst_12 = arith.constant dense<0xFF800000> : vector<8xf32>
    %14 = vector.multi_reduction <maximumf>, %13, %cst_12 [1] : vector<8x8xf32> to vector<8xf32>
    %15 = vector.shape_cast %14 : vector<8xf32> to vector<8x1xf32>
    %16 = vector.broadcast %15 : vector<8x1xf32> to vector<8x8xf32>
    %17 = arith.subf %13, %16 : vector<8x8xf32>
    %18 = math.exp %17 : vector<8x8xf32>
    %cst_13 = arith.constant dense<0.000000e+00> : vector<8xf32>
    %19 = vector.multi_reduction <add>, %18, %cst_13 [1] : vector<8x8xf32> to vector<8xf32>
    %20 = vector.shape_cast %19 : vector<8xf32> to vector<8x1xf32>
    %21 = tpu.reciprocal %20 {approx = true} : vector<8x1xf32> -> vector<8x1xf32>
    %22 = vector.broadcast %21 : vector<8x1xf32> to vector<8x8xf32>
    %23 = arith.mulf %18, %22 : vector<8x8xf32>
    %24 = arith.truncf %23 : vector<8x8xf32> to vector<8x8xbf16>
    %cst_14 = arith.constant dense<0.000000e+00> : vector<8x8xf32>
    %25 = tpu.matmul %24, %12, %cst_14 {dimension_numbers = #tpu.dot_dimension_numbers<[1], [0], [0], [1], [0, 0, 1, 1], [], []>} : vector<8x8xbf16>, vector<8x8xbf16>, vector<8x8xf32> -> vector<8x8xf32>
    %26 = arith.truncf %25 : vector<8x8xf32> to vector<8x8xbf16>
    %c0_15 = arith.constant 0 : index
    %c0_16 = arith.constant 0 : index
    %c0_17 = arith.constant 0 : index
    %c0_18 = arith.constant 0 : index
    %27 = vector.load %arg4[%c0_15, %c0_16, %c0_17, %c0_18] : memref<1x4x8x32xbf16, #tpu.memory_space<vmem>>, vector<1x1x8x32xbf16>
    %28 = vector.shape_cast %27 : vector<1x1x8x32xbf16> to vector<8x32xbf16>
    %cst_19 = arith.constant dense<0.000000e+00> : vector<8x32xf32>
    %29 = tpu.matmul %26, %28, %cst_19 {dimension_numbers = #tpu.dot_dimension_numbers<[1], [0], [0], [1], [0, 0, 1, 1], [], []>} : vector<8x8xbf16>, vector<8x32xbf16>, vector<8x32xf32> -> vector<8x32xf32>
    %c0_20 = arith.constant 0 : index
    %c0_21 = arith.constant 0 : index
    %30 = vector.load %arg16[%c0_20, %c0_21] : memref<8x32xf32, #tpu.memory_space<vmem>>, vector<8x32xf32>
    tpu.vector_store %arg16[%c0_20, %c0_21], %29 {strides = array<i32>} : memref<8x32xf32, #tpu.memory_space<vmem>>, vector<8x32xf32>,
    %c0_22 = arith.constant 0 : index
    %c8 = arith.constant 8 : index
    %31 = vector.load %arg15[%c0_22, %c8] : memref<8x96xbf16, #tpu.memory_space<vmem>>, vector<8x8xbf16>
    %c0_23 = arith.constant 0 : index
    %c40 = arith.constant 40 : index
    %32 = vector.load %arg15[%c0_23, %c40] : memref<8x96xbf16, #tpu.memory_space<vmem>>, vector<8x8xbf16>
    %c0_24 = arith.constant 0 : index
    %c72 = arith.constant 72 : index
    %33 = vector.load %arg15[%c0_24, %c72] : memref<8x96xbf16, #tpu.memory_space<vmem>>, vector<8x8xbf16>
    %cst_25 = arith.constant dense<0.000000e+00> : vector<8x8xf32>
    %34 = tpu.matmul %31, %32, %cst_25 {dimension_numbers = #tpu.dot_dimension_numbers<[1], [1], [0], [0], [0, 0, 1, 0], [], []>} : vector<8x8xbf16>, vector<8x8xbf16>, vector<8x8xf32> -> vector<8x8xf32>
    %cst_26 = arith.constant dense<0xFF800000> : vector<8xf32>
    %35 = vector.multi_reduction <maximumf>, %34, %cst_26 [1] : vector<8x8xf32> to vector<8xf32>
    %36 = vector.shape_cast %35 : vector<8xf32> to vector<8x1xf32>
    %37 = vector.broadcast %36 : vector<8x1xf32> to vector<8x8xf32>
    %38 = arith.subf %34, %37 : vector<8x8xf32>
    %39 = math.exp %38 : vector<8x8xf32>
    %cst_27 = arith.constant dense<0.000000e+00> : vector<8xf32>
    %40 = vector.multi_reduction <add>, %39, %cst_27 [1] : vector<8x8xf32> to vector<8xf32>
    %41 = vector.shape_cast %40 : vector<8xf32> to vector<8x1xf32>
    %42 = tpu.reciprocal %41 {approx = true} : vector<8x1xf32> -> vector<8x1xf32>
    %43 = vector.broadcast %42 : vector<8x1xf32> to vector<8x8xf32>
    %44 = arith.mulf %39, %43 : vector<8x8xf32>
    %45 = arith.truncf %44 : vector<8x8xf32> to vector<8x8xbf16>
    %cst_28 = arith.constant dense<0.000000e+00> : vector<8x8xf32>
    %46 = tpu.matmul %45, %33, %cst_28 {dimension_numbers = #tpu.dot_dimension_numbers<[1], [0], [0], [1], [0, 0, 1, 1], [], []>} : vector<8x8xbf16>, vector<8x8xbf16>, vector<8x8xf32> -> vector<8x8xf32>
    %47 = arith.truncf %46 : vector<8x8xf32> to vector<8x8xbf16>
    %c0_29 = arith.constant 0 : index
    %c1 = arith.constant 1 : index
    %c0_30 = arith.constant 0 : index
    %c0_31 = arith.constant 0 : index
    %48 = vector.load %arg4[%c0_29, %c1, %c0_30, %c0_31] : memref<1x4x8x32xbf16, #tpu.memory_space<vmem>>, vector<1x1x8x32xbf16>
    %49 = vector.shape_cast %48 : vector<1x1x8x32xbf16> to vector<8x32xbf16>
    %cst_32 = arith.constant dense<0.000000e+00> : vector<8x32xf32>
    %50 = tpu.matmul %47, %49, %cst_32 {dimension_numbers = #tpu.dot_dimension_numbers<[1], [0], [0], [1], [0, 0, 1, 1], [], []>} : vector<8x8xbf16>, vector<8x32xbf16>, vector<8x32xf32> -> vector<8x32xf32>
    %c0_33 = arith.constant 0 : index
    %c0_34 = arith.constant 0 : index
    %51 = vector.load %arg16[%c0_33, %c0_34] : memref<8x32xf32, #tpu.memory_space<vmem>>, vector<8x32xf32>
    %52 = arith.addf %51, %50 : vector<8x32xf32>
    %c0_35 = arith.constant 0 : index
    %c0_36 = arith.constant 0 : index
    %53 = vector.load %arg16[%c0_35, %c0_36] : memref<8x32xf32, #tpu.memory_space<vmem>>, vector<8x32xf32>
    tpu.vector_store %arg16[%c0_35, %c0_36], %52 {strides = array<i32>} : memref<8x32xf32, #tpu.memory_space<vmem>>, vector<8x32xf32>,
    %c0_37 = arith.constant 0 : index
    %c16 = arith.constant 16 : index
    %54 = vector.load %arg15[%c0_37, %c16] : memref<8x96xbf16, #tpu.memory_space<vmem>>, vector<8x8xbf16>
    %c0_38 = arith.constant 0 : index
    %c48 = arith.constant 48 : index
    %55 = vector.load %arg15[%c0_38, %c48] : memref<8x96xbf16, #tpu.memory_space<vmem>>, vector<8x8xbf16>
    %c0_39 = arith.constant 0 : index
    %c80 = arith.constant 80 : index
    %56 = vector.load %arg15[%c0_39, %c80] : memref<8x96xbf16, #tpu.memory_space<vmem>>, vector<8x8xbf16>
    %cst_40 = arith.constant dense<0.000000e+00> : vector<8x8xf32>
    %57 = tpu.matmul %54, %55, %cst_40 {dimension_numbers = #tpu.dot_dimension_numbers<[1], [1], [0], [0], [0, 0, 1, 0], [], []>} : vector<8x8xbf16>, vector<8x8xbf16>, vector<8x8xf32> -> vector<8x8xf32>
    %cst_41 = arith.constant dense<0xFF800000> : vector<8xf32>
    %58 = vector.multi_reduction <maximumf>, %57, %cst_41 [1] : vector<8x8xf32> to vector<8xf32>
    %59 = vector.shape_cast %58 : vector<8xf32> to vector<8x1xf32>
    %60 = vector.broadcast %59 : vector<8x1xf32> to vector<8x8xf32>
    %61 = arith.subf %57, %60 : vector<8x8xf32>
    %62 = math.exp %61 : vector<8x8xf32>
    %cst_42 = arith.constant dense<0.000000e+00> : vector<8xf32>
    %63 = vector.multi_reduction <add>, %62, %cst_42 [1] : vector<8x8xf32> to vector<8xf32>
    %64 = vector.shape_cast %63 : vector<8xf32> to vector<8x1xf32>
    %65 = tpu.reciprocal %64 {approx = true} : vector<8x1xf32> -> vector<8x1xf32>
    %66 = vector.broadcast %65 : vector<8x1xf32> to vector<8x8xf32>
    %67 = arith.mulf %62, %66 : vector<8x8xf32>
    %68 = arith.truncf %67 : vector<8x8xf32> to vector<8x8xbf16>
    %cst_43 = arith.constant dense<0.000000e+00> : vector<8x8xf32>
    %69 = tpu.matmul %68, %56, %cst_43 {dimension_numbers = #tpu.dot_dimension_numbers<[1], [0], [0], [1], [0, 0, 1, 1], [], []>} : vector<8x8xbf16>, vector<8x8xbf16>, vector<8x8xf32> -> vector<8x8xf32>
    %70 = arith.truncf %69 : vector<8x8xf32> to vector<8x8xbf16>
    %c0_44 = arith.constant 0 : index
    %c2 = arith.constant 2 : index
    %c0_45 = arith.constant 0 : index
    %c0_46 = arith.constant 0 : index
    %71 = vector.load %arg4[%c0_44, %c2, %c0_45, %c0_46] : memref<1x4x8x32xbf16, #tpu.memory_space<vmem>>, vector<1x1x8x32xbf16>
    %72 = vector.shape_cast %71 : vector<1x1x8x32xbf16> to vector<8x32xbf16>
    %cst_47 = arith.constant dense<0.000000e+00> : vector<8x32xf32>
    %73 = tpu.matmul %70, %72, %cst_47 {dimension_numbers = #tpu.dot_dimension_numbers<[1], [0], [0], [1], [0, 0, 1, 1], [], []>} : vector<8x8xbf16>, vector<8x32xbf16>, vector<8x32xf32> -> vector<8x32xf32>
    %c0_48 = arith.constant 0 : index
    %c0_49 = arith.constant 0 : index
    %74 = vector.load %arg16[%c0_48, %c0_49] : memref<8x32xf32, #tpu.memory_space<vmem>>, vector<8x32xf32>
    %75 = arith.addf %74, %73 : vector<8x32xf32>
    %c0_50 = arith.constant 0 : index
    %c0_51 = arith.constant 0 : index
    %76 = vector.load %arg16[%c0_50, %c0_51] : memref<8x32xf32, #tpu.memory_space<vmem>>, vector<8x32xf32>
    tpu.vector_store %arg16[%c0_50, %c0_51], %75 {strides = array<i32>} : memref<8x32xf32, #tpu.memory_space<vmem>>, vector<8x32xf32>,
    %c0_52 = arith.constant 0 : index
    %c24 = arith.constant 24 : index
    %77 = vector.load %arg15[%c0_52, %c24] : memref<8x96xbf16, #tpu.memory_space<vmem>>, vector<8x8xbf16>
    %c0_53 = arith.constant 0 : index
    %c56 = arith.constant 56 : index
    %78 = vector.load %arg15[%c0_53, %c56] : memref<8x96xbf16, #tpu.memory_space<vmem>>, vector<8x8xbf16>
    %c0_54 = arith.constant 0 : index
    %c88 = arith.constant 88 : index
    %79 = vector.load %arg15[%c0_54, %c88] : memref<8x96xbf16, #tpu.memory_space<vmem>>, vector<8x8xbf16>
    %cst_55 = arith.constant dense<0.000000e+00> : vector<8x8xf32>
    %80 = tpu.matmul %77, %78, %cst_55 {dimension_numbers = #tpu.dot_dimension_numbers<[1], [1], [0], [0], [0, 0, 1, 0], [], []>} : vector<8x8xbf16>, vector<8x8xbf16>, vector<8x8xf32> -> vector<8x8xf32>
    %cst_56 = arith.constant dense<0xFF800000> : vector<8xf32>
    %81 = vector.multi_reduction <maximumf>, %80, %cst_56 [1] : vector<8x8xf32> to vector<8xf32>
    %82 = vector.shape_cast %81 : vector<8xf32> to vector<8x1xf32>
    %83 = vector.broadcast %82 : vector<8x1xf32> to vector<8x8xf32>
    %84 = arith.subf %80, %83 : vector<8x8xf32>
    %85 = math.exp %84 : vector<8x8xf32>
    %cst_57 = arith.constant dense<0.000000e+00> : vector<8xf32>
    %86 = vector.multi_reduction <add>, %85, %cst_57 [1] : vector<8x8xf32> to vector<8xf32>
    %87 = vector.shape_cast %86 : vector<8xf32> to vector<8x1xf32>
    %88 = tpu.reciprocal %87 {approx = true} : vector<8x1xf32> -> vector<8x1xf32>
    %89 = vector.broadcast %88 : vector<8x1xf32> to vector<8x8xf32>
    %90 = arith.mulf %85, %89 : vector<8x8xf32>
    %91 = arith.truncf %90 : vector<8x8xf32> to vector<8x8xbf16>
    %cst_58 = arith.constant dense<0.000000e+00> : vector<8x8xf32>
    %92 = tpu.matmul %91, %79, %cst_58 {dimension_numbers = #tpu.dot_dimension_numbers<[1], [0], [0], [1], [0, 0, 1, 1], [], []>} : vector<8x8xbf16>, vector<8x8xbf16>, vector<8x8xf32> -> vector<8x8xf32>
    %93 = arith.truncf %92 : vector<8x8xf32> to vector<8x8xbf16>
    %c0_59 = arith.constant 0 : index
    %c3 = arith.constant 3 : index
    %c0_60 = arith.constant 0 : index
    %c0_61 = arith.constant 0 : index
    %94 = vector.load %arg4[%c0_59, %c3, %c0_60, %c0_61] : memref<1x4x8x32xbf16, #tpu.memory_space<vmem>>, vector<1x1x8x32xbf16>
    %95 = vector.shape_cast %94 : vector<1x1x8x32xbf16> to vector<8x32xbf16>
    %cst_62 = arith.constant dense<0.000000e+00> : vector<8x32xf32>
    %96 = tpu.matmul %93, %95, %cst_62 {dimension_numbers = #tpu.dot_dimension_numbers<[1], [0], [0], [1], [0, 0, 1, 1], [], []>} : vector<8x8xbf16>, vector<8x32xbf16>, vector<8x32xf32> -> vector<8x32xf32>
    %c0_63 = arith.constant 0 : index
    %c0_64 = arith.constant 0 : index
    %97 = vector.load %arg16[%c0_63, %c0_64] : memref<8x32xf32, #tpu.memory_space<vmem>>, vector<8x32xf32>
    %98 = arith.addf %97, %96 : vector<8x32xf32>
    %c0_65 = arith.constant 0 : index
    %c0_66 = arith.constant 0 : index
    %99 = vector.load %arg16[%c0_65, %c0_66] : memref<8x32xf32, #tpu.memory_space<vmem>>, vector<8x32xf32>
    tpu.vector_store %arg16[%c0_65, %c0_66], %98 {strides = array<i32>} : memref<8x32xf32, #tpu.memory_space<vmem>>, vector<8x32xf32>,
    %c0_67 = arith.constant 0 : index
    %c0_68 = arith.constant 0 : index
    %100 = vector.load %arg16[%c0_67, %c0_68] : memref<8x32xf32, #tpu.memory_space<vmem>>, vector<8x32xf32>
    %101 = arith.addf %3, %100 : vector<8x32xf32>
    %cst_69 = arith.constant dense<0.000000e+00> : vector<8xf32>
    %102 = vector.multi_reduction <add>, %101, %cst_69 [1] : vector<8x32xf32> to vector<8xf32>
    %103 = vector.shape_cast %102 : vector<8xf32> to vector<8x1xf32>
    %cst_70 = arith.constant 3.200000e+01 : f32
    %104 = vector.broadcast %cst_70 : f32 to vector<8x1xf32>
    %105 = arith.divf %103, %104 : vector<8x1xf32>
    %106 = vector.broadcast %105 : vector<8x1xf32> to vector<8x32xf32>
    %107 = arith.subf %101, %106 : vector<8x32xf32>
    %108 = arith.mulf %107, %107 : vector<8x32xf32>
    %cst_71 = arith.constant dense<0.000000e+00> : vector<8xf32>
    %109 = vector.multi_reduction <add>, %108, %cst_71 [1] : vector<8x32xf32> to vector<8xf32>
    %110 = vector.shape_cast %109 : vector<8xf32> to vector<8x1xf32>
    %cst_72 = arith.constant 3.200000e+01 : f32
    %111 = vector.broadcast %cst_72 : f32 to vector<8x1xf32>
    %112 = arith.divf %110, %111 : vector<8x1xf32>
    %113 = vector.broadcast %105 : vector<8x1xf32> to vector<8x32xf32>
    %114 = arith.subf %101, %113 : vector<8x32xf32>
    %cst_73 = arith.constant 9.99999974E-6 : f32
    %115 = vector.broadcast %cst_73 : f32 to vector<8x1xf32>
    %116 = arith.addf %112, %115 : vector<8x1xf32>
    %117 = math.rsqrt %116 : vector<8x1xf32>
    %118 = vector.broadcast %117 : vector<8x1xf32> to vector<8x32xf32>
    %119 = arith.mulf %114, %118 : vector<8x32xf32>
    %c0_74 = arith.constant 0 : index
    %c0_75 = arith.constant 0 : index
    %c0_76 = arith.constant 0 : index
    %120 = vector.load %arg5[%c0_74, %c0_75, %c0_76] : memref<1x1x32xf32, #tpu.memory_space<vmem>>, vector<1x1x32xf32>
    %121 = vector.shape_cast %120 : vector<1x1x32xf32> to vector<1x32xf32>
    %122 = vector.broadcast %121 : vector<1x32xf32> to vector<8x32xf32>
    %123 = arith.mulf %119, %122 : vector<8x32xf32>
    %c0_77 = arith.constant 0 : index
    %c0_78 = arith.constant 0 : index
    %c0_79 = arith.constant 0 : index
    %124 = vector.load %arg6[%c0_77, %c0_78, %c0_79] : memref<1x1x32xf32, #tpu.memory_space<vmem>>, vector<1x1x32xf32>
    %125 = vector.shape_cast %124 : vector<1x1x32xf32> to vector<1x32xf32>
    %126 = vector.broadcast %125 : vector<1x32xf32> to vector<8x32xf32>
    %127 = arith.addf %123, %126 : vector<8x32xf32>
    %128 = arith.truncf %127 : vector<8x32xf32> to vector<8x32xbf16>
    %c0_80 = arith.constant 0 : index
    %c0_81 = arith.constant 0 : index
    %c0_82 = arith.constant 0 : index
    %129 = vector.load %arg7[%c0_80, %c0_81, %c0_82] : memref<1x32x64xbf16, #tpu.memory_space<vmem>>, vector<1x32x64xbf16>
    %130 = vector.shape_cast %129 : vector<1x32x64xbf16> to vector<32x64xbf16>
    %cst_83 = arith.constant dense<0.000000e+00> : vector<8x64xf32>
    %131 = tpu.matmul %128, %130, %cst_83 {dimension_numbers = #tpu.dot_dimension_numbers<[1], [0], [0], [1], [0, 0, 1, 1], [], []>} : vector<8x32xbf16>, vector<32x64xbf16>, vector<8x64xf32> -> vector<8x64xf32>
    %c0_84 = arith.constant 0 : index
    %c0_85 = arith.constant 0 : index
    %c0_86 = arith.constant 0 : index
    %132 = vector.load %arg8[%c0_84, %c0_85, %c0_86] : memref<1x1x64xf32, #tpu.memory_space<vmem>>, vector<1x1x64xf32>
    %133 = vector.shape_cast %132 : vector<1x1x64xf32> to vector<1x64xf32>
    %134 = vector.broadcast %133 : vector<1x64xf32> to vector<8x64xf32>
    %135 = arith.addf %131, %134 : vector<8x64xf32>
    %cst_87 = arith.constant 5.000000e-01 : f32
    %136 = vector.broadcast %cst_87 : f32 to vector<8x64xf32>
    %137 = arith.mulf %136, %135 : vector<8x64xf32>
    %cst_88 = arith.constant 0.707106769 : f32
    %138 = vector.broadcast %cst_88 : f32 to vector<8x64xf32>
    %139 = arith.mulf %135, %138 : vector<8x64xf32>
    %140 = math.erf %139 : vector<8x64xf32>
    %cst_89 = arith.constant 1.000000e+00 : f32
    %141 = vector.broadcast %cst_89 : f32 to vector<8x64xf32>
    %142 = arith.addf %141, %140 : vector<8x64xf32>
    %143 = arith.mulf %137, %142 : vector<8x64xf32>
    %144 = arith.truncf %143 : vector<8x64xf32> to vector<8x64xbf16>
    %c0_90 = arith.constant 0 : index
    %c0_91 = arith.constant 0 : index
    %c0_92 = arith.constant 0 : index
    %145 = vector.load %arg9[%c0_90, %c0_91, %c0_92] : memref<1x64x32xbf16, #tpu.memory_space<vmem>>, vector<1x64x32xbf16>
    %146 = vector.shape_cast %145 : vector<1x64x32xbf16> to vector<64x32xbf16>
    %cst_93 = arith.constant dense<0.000000e+00> : vector<8x32xf32>
    %147 = tpu.matmul %144, %146, %cst_93 {dimension_numbers = #tpu.dot_dimension_numbers<[1], [0], [0], [1], [0, 0, 1, 1], [], []>} : vector<8x64xbf16>, vector<64x32xbf16>, vector<8x32xf32> -> vector<8x32xf32>
    %c0_94 = arith.constant 0 : index
    %c0_95 = arith.constant 0 : index
    %c0_96 = arith.constant 0 : index
    %148 = vector.load %arg10[%c0_94, %c0_95, %c0_96] : memref<1x1x32xf32, #tpu.memory_space<vmem>>, vector<1x1x32xf32>
    %149 = vector.shape_cast %148 : vector<1x1x32xf32> to vector<1x32xf32>
    %150 = vector.broadcast %149 : vector<1x32xf32> to vector<8x32xf32>
    %151 = arith.addf %147, %150 : vector<8x32xf32>
    %152 = arith.addf %127, %151 : vector<8x32xf32>
    %cst_97 = arith.constant dense<0.000000e+00> : vector<8xf32>
    %153 = vector.multi_reduction <add>, %152, %cst_97 [1] : vector<8x32xf32> to vector<8xf32>
    %154 = vector.shape_cast %153 : vector<8xf32> to vector<8x1xf32>
    %cst_98 = arith.constant 3.200000e+01 : f32
    %155 = vector.broadcast %cst_98 : f32 to vector<8x1xf32>
    %156 = arith.divf %154, %155 : vector<8x1xf32>
    %157 = vector.broadcast %156 : vector<8x1xf32> to vector<8x32xf32>
    %158 = arith.subf %152, %157 : vector<8x32xf32>
    %159 = arith.mulf %158, %158 : vector<8x32xf32>
    %cst_99 = arith.constant dense<0.000000e+00> : vector<8xf32>
    %160 = vector.multi_reduction <add>, %159, %cst_99 [1] : vector<8x32xf32> to vector<8xf32>
    %161 = vector.shape_cast %160 : vector<8xf32> to vector<8x1xf32>
    %cst_100 = arith.constant 3.200000e+01 : f32
    %162 = vector.broadcast %cst_100 : f32 to vector<8x1xf32>
    %163 = arith.divf %161, %162 : vector<8x1xf32>
    %164 = vector.broadcast %156 : vector<8x1xf32> to vector<8x32xf32>
    %165 = arith.subf %152, %164 : vector<8x32xf32>
    %cst_101 = arith.constant 9.99999974E-6 : f32
    %166 = vector.broadcast %cst_101 : f32 to vector<8x1xf32>
    %167 = arith.addf %163, %166 : vector<8x1xf32>
    %168 = math.rsqrt %167 : vector<8x1xf32>
    %169 = vector.broadcast %168 : vector<8x1xf32> to vector<8x32xf32>
    %170 = arith.mulf %165, %169 : vector<8x32xf32>
    %c0_102 = arith.constant 0 : index
    %c0_103 = arith.constant 0 : index
    %c0_104 = arith.constant 0 : index
    %171 = vector.load %arg11[%c0_102, %c0_103, %c0_104] : memref<1x1x32xf32, #tpu.memory_space<vmem>>, vector<1x1x32xf32>
    %172 = vector.shape_cast %171 : vector<1x1x32xf32> to vector<1x32xf32>
    %173 = vector.broadcast %172 : vector<1x32xf32> to vector<8x32xf32>
    %174 = arith.mulf %170, %173 : vector<8x32xf32>
    %c0_105 = arith.constant 0 : index
    %c0_106 = arith.constant 0 : index
    %c0_107 = arith.constant 0 : index
    %175 = vector.load %arg12[%c0_105, %c0_106, %c0_107] : memref<1x1x32xf32, #tpu.memory_space<vmem>>, vector<1x1x32xf32>
    %176 = vector.shape_cast %175 : vector<1x1x32xf32> to vector<1x32xf32>
    %177 = vector.broadcast %176 : vector<1x32xf32> to vector<8x32xf32>
    %178 = arith.addf %174, %177 : vector<8x32xf32>
    %c0_108 = arith.constant 0 : index
    %c0_109 = arith.constant 0 : index
    %179 = vector.load %arg14[%c0_108, %c0_109] : memref<8x32xf32, #tpu.memory_space<vmem>>, vector<8x32xf32>
    tpu.vector_store %arg14[%c0_108, %c0_109], %178 {strides = array<i32>} : memref<8x32xf32, #tpu.memory_space<vmem>>, vector<8x32xf32>,
    %c1_i32 = arith.constant 1 : i32
    %180 = arith.cmpi eq, %arg1, %c1_i32 : i32
    %181 = arith.extui %180 : i1 to i32
    %c0_i32_110 = arith.constant 0 : i32
    %182 = arith.cmpi ne, %181, %c0_i32_110 : i32
    scf.if %182 {
      %c0_111 = arith.constant 0 : index
      %c0_112 = arith.constant 0 : index
      %c0_113 = arith.constant 0 : index
      %183 = vector.load %arg13[%c0_111, %c0_112, %c0_113] : memref<1x8x32xf32, #tpu.memory_space<vmem>>, vector<1x8x32xf32>
      %184 = vector.shape_cast %183 : vector<1x8x32xf32> to vector<8x32xf32>
      %185 = vector.shape_cast %178 : vector<8x32xf32> to vector<1x8x32xf32>
      tpu.vector_store %arg13[%c0_111, %c0_112, %c0_113], %185 {strides = array<i32>} : memref<1x8x32xf32, #tpu.memory_space<vmem>>, vector<1x8x32xf32>,
    } else {
    }
    return
  }
  func.func @transform_0(%arg0: i32, %arg1: i32) -> (i32, i32, i32) {
    %c0_i32 = arith.constant 0 : i32
    %c0_i32_0 = arith.constant 0 : i32
    %c0_i32_1 = arith.constant 0 : i32
    return %arg0, %c0_i32, %c0_i32_0 : i32, i32, i32
  }
  func.func @transform_1(%arg0: i32, %arg1: i32) -> (i32, i32, i32) {
    %c0_i32 = arith.constant 0 : i32
    %c0_i32_0 = arith.constant 0 : i32
    %c0_i32_1 = arith.constant 0 : i32
    return %arg1, %c0_i32, %c0_i32_0 : i32, i32, i32
  }
  func.func @transform_2(%arg0: i32, %arg1: i32) -> (i32, i32, i32, i32) {
    %c0_i32 = arith.constant 0 : i32
    %c0_i32_0 = arith.constant 0 : i32
    %c0_i32_1 = arith.constant 0 : i32
    %c0_i32_2 = arith.constant 0 : i32
    return %arg1, %c0_i32, %c0_i32_0, %c0_i32_1 : i32, i32, i32, i32
  }
  func.func @transform_3(%arg0: i32, %arg1: i32) -> (i32, i32, i32) {
    %c0_i32 = arith.constant 0 : i32
    %c0_i32_0 = arith.constant 0 : i32
    %c0_i32_1 = arith.constant 0 : i32
    return %arg1, %c0_i32, %c0_i32_0 : i32, i32, i32
  }
  func.func @transform_4(%arg0: i32, %arg1: i32) -> (i32, i32, i32) {
    %c0_i32 = arith.constant 0 : i32
    %c0_i32_0 = arith.constant 0 : i32
    %c0_i32_1 = arith.constant 0 : i32
    return %arg1, %c0_i32, %c0_i32_0 : i32, i32, i32
  }
  func.func @transform_5(%arg0: i32, %arg1: i32) -> (i32, i32, i32) {
    %c0_i32 = arith.constant 0 : i32
    %c0_i32_0 = arith.constant 0 : i32
    %c0_i32_1 = arith.constant 0 : i32
    return %arg1, %c0_i32, %c0_i32_0 : i32, i32, i32
  }
  func.func @transform_6(%arg0: i32, %arg1: i32) -> (i32, i32, i32) {
    %c0_i32 = arith.constant 0 : i32
    %c0_i32_0 = arith.constant 0 : i32
    %c0_i32_1 = arith.constant 0 : i32
    return %arg1, %c0_i32, %c0_i32_0 : i32, i32, i32
  }
  func.func @transform_7(%arg0: i32, %arg1: i32) -> (i32, i32, i32) {
    %c0_i32 = arith.constant 0 : i32
    %c0_i32_0 = arith.constant 0 : i32
    %c0_i32_1 = arith.constant 0 : i32
    return %arg1, %c0_i32, %c0_i32_0 : i32, i32, i32
  }
  func.func @transform_8(%arg0: i32, %arg1: i32) -> (i32, i32, i32) {
    %c0_i32 = arith.constant 0 : i32
    %c0_i32_0 = arith.constant 0 : i32
    %c0_i32_1 = arith.constant 0 : i32
    return %arg1, %c0_i32, %c0_i32_0 : i32, i32, i32
  }
  func.func @transform_9(%arg0: i32, %arg1: i32) -> (i32, i32, i32) {
    %c0_i32 = arith.constant 0 : i32
    %c0_i32_0 = arith.constant 0 : i32
    %c0_i32_1 = arith.constant 0 : i32
    return %arg1, %c0_i32, %c0_i32_0 : i32, i32, i32
  }
  func.func @transform_10(%arg0: i32, %arg1: i32) -> (i32, i32, i32) {
    %c0_i32 = arith.constant 0 : i32
    %c0_i32_0 = arith.constant 0 : i32
    %c0_i32_1 = arith.constant 0 : i32
    return %arg1, %c0_i32, %c0_i32_0 : i32, i32, i32
  }
  func.func @transform_11(%arg0: i32, %arg1: i32) -> (i32, i32, i32) {
    %c0_i32 = arith.constant 0 : i32
    %c0_i32_0 = arith.constant 0 : i32
    %c0_i32_1 = arith.constant 0 : i32
    return %arg0, %c0_i32, %c0_i32_0 : i32, i32, i32
  }
}

</mosaic_0001>

<bundles_post_ra>
// kernel: tpu_custom_call.1
= control target key start
LH: loop header
LB: loop body
LE: loop exit
PB: predicated region body
PF: predicated region fallthrough
CT: control target
= control target key end

     0   :  { %s3744_s0 = inlined_call_operand.hbm [shape: f32[2,8,32], index: 0, kind: input, shape index: {}]   ;;  %s3745_s1 = inlined_call_operand.hbm [shape: bf16[2,32,96], index: 1, kind: input, shape index: {}]   ;;  %s3746_s2 = inlined_call_operand.hbm [shape: bf16[2,4,8,32], index: 2, kind: input, shape index: {}]   ;;  %s3747_s3 = inlined_call_operand.hbm [shape: f32[2,1,32], index: 3, kind: input, shape index: {}]   ;;  %s3748_s4 = inlined_call_operand.hbm [shape: f32[2,1,32], index: 4, kind: input, shape index: {}]   ;;  %s3749_s5 = inlined_call_operand.hbm [shape: bf16[2,32,64], index: 5, kind: input, shape index: {}]   ;;  %s3750_s6 = inlined_call_operand.hbm [shape: f32[2,1,64], index: 6, kind: input, shape index: {}]   ;;  %s3751_s7 = inlined_call_operand.hbm [shape: bf16[2,64,32], index: 7, kind: input, shape index: {}]   ;;  %s3752_s8 = inlined_call_operand.hbm [shape: f32[2,1,32], index: 8, kind: input, shape index: {}]   ;;  %s3753_s9 = inlined_call_operand.hbm [shape: f32[2,1,32], index: 9, kind: input, shape index: {}]   ;;  %s3754_s10 = inlined_call_operand.hbm [shape: f32[2,1,32], index: 10, kind: input, shape index: {}]   ;;  %s3755_s11 = inlined_call_operand.hbm [shape: f32[2,8,32], index: 11, kind: output, shape index: {}]  }
   0x1   :  { %3787 = sst [smem:[#allocation43_spill]] %s3744_s0 }
   0x2   :  { %3788 = sst [smem:[#allocation44_spill]] %s3745_s1 }
   0x3   :  { %3789 = sst [smem:[#allocation45_spill]] %s3746_s2 }
   0x4   :  { %3790 = sst [smem:[#allocation46_spill]] %s3747_s3 }
   0x5   :  { %3791 = sst [smem:[#allocation47_spill]] %s3748_s4 }
   0x6   :  { %3792 = sst [smem:[#allocation48_spill]] %s3749_s5 }
   0x7   :  { %3793 = sst [smem:[#allocation49_spill]] %s3750_s6 }
   0x8   :  { %3794 = sst [smem:[#allocation50_spill]] %s3751_s7 }
   0x9   :  { %3795 = sst [smem:[#allocation51_spill]] %s3752_s8 }
   0xa   :  { %3796 = sst [smem:[#allocation52_spill]] %s3753_s9 }
   0xb   :  { %3797 = sst [smem:[#allocation53_spill]] %s3754_s10 }
   0xc   :  { %3798 = sst [smem:[#allocation54_spill]] %s3755_s11 }
   0xd   :  { %16 = vsyncpa [#allocation6], 0 }
   0xe   :  { %18 = vsyncpa [#allocation6 + $0x1], 0 }
   0xf   :  { %19 = vsyncpa [#allocation9], 0 }
  0x10   :  { %21 = vsyncpa [#allocation9 + $0x1], 0 }
  0x11   :  { %22 = vsyncpa [#allocation12], 0 }
  0x12   :  { %24 = vsyncpa [#allocation12 + $0x1], 0 }
  0x13   :  { %25 = vsyncpa [#allocation15], 0 }
  0x14   :  { %27 = vsyncpa [#allocation15 + $0x1], 0 }
  0x15   :  { %28 = vsyncpa [#allocation18], 0 }
  0x16   :  { %30 = vsyncpa [#allocation18 + $0x1], 0 }
  0x17   :  { %31 = vsyncpa [#allocation21], 0 }
  0x18   :  { %33 = vsyncpa [#allocation21 + $0x1], 0 }
  0x19   :  { %34 = vsyncpa [#allocation7], 0 }
  0x1a   :  { %36 = vsyncpa [#allocation7 + $0x1], 0  ;;  %s2987_s17 = smov 0   ;;  %s2989_s18 = smov 0  }
  0x1b   :  { %s2991_s19 = smov 0   ;;  %s2993_s20 = smov 0  }
  0x1c   :  { %s2995_s21 = smov 0   ;;  %s2997_s22 = smov 0  }
  0x1d   :  { %s2999_s23 = smov 0   ;;  %s3001_s24 = smov 0  }
  0x1e   :  { %s3003_s25 = smov 0   ;;  %s3005_s26 = smov 0  }
  0x1f   :  { %s3007_s27 = smov 0  }
  0x20 LB: > { %3799 = sst [smem:[#allocation31_spill]] %s2866_s19  ;;  %p3762_p0 = scmp.eq.s32.totalorder %s2898_s27, 0  ;;  %s2898_s27 = sphi %s3007_s27, %s42_s27   ;;  %s2894_s26 = sphi %s3005_s26, %s3870_s26   ;;  %s2890_s25 = sphi %s3003_s25, %s3869_s25   ;;  %s2886_s24 = sphi %s3001_s24, %s3868_s24   ;;  %s2882_s23 = sphi %s2999_s23, %s3867_s23   ;;  %s2878_s22 = sphi %s2997_s22, %s3866_s22   ;;  %s2874_s21 = sphi %s2995_s21, %s3874_s21   ;;  %s2870_s20 = sphi %s2993_s20, %s3873_s20   ;;  %s2866_s19 = sphi %s2991_s19, %s3864_s19   ;;  %s2862_s18 = sphi %s2989_s18, %s3872_s18   ;;  %s2858_s17 = sphi %s2987_s17, %s3871_s17  }
  0x21   : > { %3800 = sst [smem:[#allocation32_spill]] %s2878_s22  ;;  %p94_p1 = scmp.ne.s32.totalorder %s2866_s19, %s2862_s18 }
  0x22   : > { %3801 = sst [smem:[#allocation33_spill]] %s2882_s23  ;;  %p3761_p2 = scmp.lt.s32.totalorder %s2898_s27, 4 }
  0x23   : > { %3802 = sst [smem:[#allocation34_spill]] %s2886_s24  ;;  %p96_p3 = por %p94_p1, %p3762_p0 }
  0x24   : > { %3803 = sst [smem:[#allocation35_spill]] %s2890_s25  ;;  %s3049_s28 = sand.u32 1, %s2898_s27  }
  0x25   : > { %3804 = sst [smem:[#allocation36_spill]] %s2894_s26  ;;  %s3052_s29 = sand.u32 1, %s2866_s19  }
  0x26   : > { %s3055_s30 = sshll.u32 %s3052_s29, 4  ;;  %s3058_s12 = sshll.u32 %s2890_s25, 8 }
  0x27   : > { %3805 = sst [smem:[#allocation37_spill]] %s3055_s30  ;;  %s3806_s1 = sld [smem:[#allocation44_spill]] }
  0x28   : > { %s406_s16 = scalar_lea.vmem [#allocation8], %s3055_s30  ;;  %p3069_p4 = pnand %p3761_p2, %p96_p3 }
  0x29   : > { %s413_s11 = sshll.u32 %s406_s16, 4  ;;  %s3073_s11 = int_to_ptr.vmem [resolvable:$true] %s413_s11 }
  0x2a   : > { %s3807_s24 = scalar_select %p3069_p4, 1, 0 }
  0x2b   : > { %p3080_p6 = pneg %p3069_p4 }
  0x2d   : > { %s3064_s15 = scalar_lea.hbm %s3806_s1, %s3058_s12  ;;  %s2431_s8 = scalar_lea.hbm %s3806_s1, 512 }
  0x2e   : > { %s2426_s10 = scalar_lea.hbm %s3064_s15, 256  ;;  %p2432_p9 = scmp.lt.u32.totalorder %s3064_s15, %s3806_s1 }
  0x2f   : > { %p2427_p5 = scmp.ne.s32.totalorder %s3064_s15, %s2426_s10  ;;  %p2433_p10 = scmp.lt.u32.totalorder %s2431_s8, %s2426_s10 }
  0x30   : > { %p2435_p12 = scmp.lt.u32.totalorder %s2426_s10, %s3064_s15 }
  0x31   : > { %p2429_p7 = pnand %p3080_p6, %p2427_p5  ;;  %p2434_p11 = por %p2433_p10, %p2432_p9 }
  0x33   : > { %p2430_p8 = pneg %p2429_p7  ;;  %p2436_p13 = por %p2435_p12, %p2434_p11 }
  0x35   : > { %p2437_p1 = pnand %p2436_p13, %p2430_p8 }
  0x37   : > { %2440 = shalt.err (!%p2437_p1)
}
  0x38   : > { %s2441_s23 = scalar_lea.vmem %s3073_s11, 256  ;;  %s2900_s14 = smov [#allocation8]  }
  0x39   : > { %p2442_p3 = scmp.ne.s32.totalorder %s3073_s11, %s2441_s23  ;;  %s2446_s16 = sshll.u32 %s2900_s14, 4  ;;  %s2447_s16 = int_to_ptr.vmem [resolvable:$false] %s2446_s16 }
  0x3a   : > { %s2448_s4 = scalar_lea.vmem %s2447_s16, 512  ;;  %p2449_p2 = scmp.lt.s32.totalorder %s3073_s11, %s2447_s16 }
  0x3b   : > { %p2444_p5 = pnand %p2442_p3, %p3080_p6  ;;  %p2450_p0 = scmp.lt.s32.totalorder %s2448_s4, %s2441_s23 }
  0x3d   : > { %p2445_p7 = pneg %p2444_p5  ;;  %p2451_p9 = por %p2450_p0, %p2449_p2 }
  0x3f   : > { %p2452_p10 = pnand %p2451_p9, %p2445_p7 }
  0x41   : > { %2455 = shalt.err (!%p2452_p10)
}
  0x42   : > { %s3764_s6 = smov 64   ;;  %s3766_s8 = smov 4  }
  0x43   : > { %s3809_s10 = scalar_lea.sflag [#allocation9], %s3049_s28  ;;  %p2037_p0 = scmp.ge.s32.totalorder %s2898_s27, 1 }
  0x44   : > { %2255 = dma.hbm_to_vmem [thread:$0]  (!%p3069_p4), %s3064_s15, 256, %s3073_s11, %s3809_s10, %s3764_s6, %s3764_s6, %s3766_s8  }
  0x45   : > { %p586_p2 = scmp.lt.s32.totalorder %s2898_s27, 5  ;;  %s3115_s14 = sshll.u32 %s2890_s25, 4 }
  0x46   : > { %s3812_s3 = sld [smem:[#allocation46_spill]]  ;;  %s447_s2 = scalar_lea.vmem [#allocation11], %s3052_s29 }
  0x47   : > { %p3110_p8 = pnand %p2037_p0, %p586_p2  ;;  %s454_s11 = sshll.u32 %s447_s2, 4  ;;  %s455_s11 = int_to_ptr.vmem [resolvable:$true] %s454_s11 }
  0x49   : > { %s3810_s23 = scalar_select %p3110_p8, 1, 0 }
  0x4b   : > { %3811 = sst [smem:[#allocation38_spill]] %s3810_s23 }
  0x4c   : > { %s3121_s1 = scalar_lea.hbm %s3812_s3, %s3115_s14  ;;  %s2461_s23 = scalar_lea.hbm %s3812_s3, 32 }
  0x4d   : > { %s2456_s10 = scalar_lea.hbm %s3121_s1, 16  ;;  %p2462_p1 = scmp.lt.u32.totalorder %s3121_s1, %s3812_s3 }
  0x4e   : > { %p2457_p11 = scmp.ne.s32.totalorder %s3121_s1, %s2456_s10  ;;  %p2463_p3 = scmp.lt.u32.totalorder %s2461_s23, %s2456_s10 }
  0x4f   : > { %p2465_p7 = scmp.lt.u32.totalorder %s2456_s10, %s3121_s1 }
  0x50   : > { %p2459_p12 = pnand %p2457_p11, %p3080_p6  ;;  %p2464_p5 = por %p2463_p3, %p2462_p1 }
  0x52   : > { %p2460_p13 = pneg %p2459_p12  ;;  %p2466_p9 = por %p2465_p7, %p2464_p5 }
  0x54   : > { %p2467_p10 = pnand %p2466_p9, %p2460_p13 }
  0x56   : > { %2470 = shalt.err (!%p2467_p10)
}
  0x57   : > { %s2471_s2 = scalar_lea.vmem %s455_s11, 16  ;;  %s2903_s15 = smov [#allocation11]  }
  0x58   : > { %p2472_p0 = scmp.ne.s32.totalorder %s455_s11, %s2471_s2  ;;  %s2476_s0 = sshll.u32 %s2903_s15, 4  ;;  %s2477_s0 = int_to_ptr.vmem [resolvable:$false] %s2476_s0 }
  0x59   : > { %s2478_s6 = scalar_lea.vmem %s2477_s0, 32  ;;  %p2479_p12 = scmp.lt.s32.totalorder %s455_s11, %s2477_s0 }
  0x5a   : > { %p2474_p2 = pnand %p2472_p0, %p3080_p6  ;;  %p2480_p8 = scmp.lt.s32.totalorder %s2478_s6, %s2471_s2 }
  0x5c   : > { %p2475_p11 = pneg %p2474_p2  ;;  %p2481_p4 = por %p2480_p8, %p2479_p12 }
  0x5e   : > { %p2482_p1 = pnand %p2481_p4, %p2475_p11 }
  0x60   : > { %2485 = shalt.err (!%p2482_p1)
}
  0x61   : > { %p3813_p3 = scmp.ne.s32.totalorder %s3807_s24, 0  ;;  %s3814_s8 = scalar_lea.sflag [#allocation12], %s3049_s28 }
  0x62   : > { %s3815_s5 = sld [smem:[#allocation48_spill]]  ;;  %s482_s0 = scalar_lea.vmem [#allocation14], %s3055_s30 }
  0x63   : > { %2261 = dma.hbm_to_vmem [thread:$0]  (!%p3813_p3), %s3121_s1, 16, %s455_s11, %s3814_s8  }
  0x64   : > { %s489_s16 = sshll.u32 %s482_s0, 4  ;;  %s2031_s4 = sshll.u32 %s3052_s29, 5  ;;  %s3151_s16 = int_to_ptr.vmem [resolvable:$true] %s489_s16 }
  0x65   : > { %s3774_s2 = scalar_lea.sflag [#allocation15], %s3049_s28 }
  0x68   : > { %s3148_s10 = scalar_lea.hbm %s3815_s5, %s3058_s12  ;;  %s2491_s8 = scalar_lea.hbm %s3815_s5, 512 }
  0x69   : > { %s2486_s6 = scalar_lea.hbm %s3148_s10, 256  ;;  %p2492_p5 = scmp.lt.u32.totalorder %s3148_s10, %s3815_s5 }
  0x6a   : > { %p2487_p4 = scmp.ne.s32.totalorder %s3148_s10, %s2486_s6  ;;  %p2493_p7 = scmp.lt.u32.totalorder %s2491_s8, %s2486_s6 }
  0x6b   : > { %p2495_p10 = scmp.lt.u32.totalorder %s2486_s6, %s3148_s10 }
  0x6c   : > { %p2489_p8 = pnand %p2487_p4, %p3080_p6  ;;  %p2494_p9 = por %p2493_p7, %p2492_p5 }
  0x6e   : > { %p2490_p13 = pneg %p2489_p8  ;;  %p2496_p0 = por %p2495_p10, %p2494_p9 }
  0x70   : > { %p2497_p2 = pnand %p2496_p0, %p2490_p13 }
  0x72   : > { %2500 = shalt.err (!%p2497_p2)
}
  0x73   : > { %s2501_s0 = scalar_lea.vmem %s3151_s16, 256  ;;  %s2904_s1 = smov [#allocation14]  }
  0x74   : > { %p2502_p11 = scmp.ne.s32.totalorder %s3151_s16, %s2501_s0  ;;  %s2506_s11 = sshll.u32 %s2904_s1, 4  ;;  %s2507_s11 = int_to_ptr.vmem [resolvable:$false] %s2506_s11 }
  0x75   : > { %s2508_s23 = scalar_lea.vmem %s2507_s11, 512  ;;  %p2509_p4 = scmp.lt.s32.totalorder %s3151_s16, %s2507_s11 }
  0x76   : > { %p2504_p12 = pnand %p2502_p11, %p3080_p6  ;;  %p2510_p8 = scmp.lt.s32.totalorder %s2508_s23, %s2501_s0 }
  0x78   : > { %p2505_p1 = pneg %p2504_p12  ;;  %p2511_p5 = por %p2510_p8, %p2509_p4 }
  0x7a   : > { %p2512_p7 = pnand %p2511_p5, %p2505_p1 }
  0x7c   : > { %2515 = shalt.err (!%p2512_p7)
}
  0x7d   : > { %s3816_s6 = smov 4   ;;  %s3817_s8 = smov 64  }
  0x7e   : > { %2267 = dma.hbm_to_vmem [thread:$0]  (!%p3813_p3), %s3148_s10, 256, %s3151_s16, %s3774_s2, %s3817_s8, %s3817_s8, %s3816_s6  }
  0x7f   : > { %s2089_s15 = sshll.u32 %s2890_s25, 9  ;;  %s3818_s7 = sld [smem:[#allocation50_spill]] }
  0x80   : > { %s520_s23 = scalar_lea.vmem [#allocation17], %s2031_s4  ;;  %s3773_s5 = scalar_lea.sflag [#allocation18], %s3049_s28 }
  0x81   : > { %s527_s3 = sshll.u32 %s520_s23, 4  ;;  %s3189_s3 = int_to_ptr.vmem [resolvable:$true] %s527_s3 }
  0x85   : > { %s3185_s11 = scalar_lea.hbm %s3818_s7, %s2089_s15  ;;  %s2521_s15 = scalar_lea.hbm %s3818_s7, 1024 }
  0x86   : > { %s2516_s30 = scalar_lea.hbm %s3185_s11, 512  ;;  %p2522_p0 = scmp.lt.u32.totalorder %s3185_s11, %s3818_s7 }
  0x87   : > { %p2517_p13 = scmp.ne.s32.totalorder %s3185_s11, %s2516_s30  ;;  %p2523_p2 = scmp.lt.u32.totalorder %s2521_s15, %s2516_s30 }
  0x88   : > { %p2525_p12 = scmp.lt.u32.totalorder %s2516_s30, %s3185_s11 }
  0x89   : > { %p2519_p9 = pnand %p2517_p13, %p3080_p6  ;;  %p2524_p11 = por %p2523_p2, %p2522_p0 }
  0x8b   : > { %p2520_p10 = pneg %p2519_p9  ;;  %p2526_p1 = por %p2525_p12, %p2524_p11 }
  0x8d   : > { %p2527_p4 = pnand %p2526_p1, %p2520_p10 }
  0x8f   : > { %2530 = shalt.err (!%p2527_p4)
}
  0x90   : > { %s2531_s4 = scalar_lea.vmem %s3189_s3, 512  ;;  %s2905_s23 = smov [#allocation17]  }
  0x91   : > { %p2532_p8 = scmp.ne.s32.totalorder %s3189_s3, %s2531_s4  ;;  %s2536_s10 = sshll.u32 %s2905_s23, 4  ;;  %s2537_s10 = int_to_ptr.vmem [resolvable:$false] %s2536_s10 }
  0x92   : > { %s2538_s16 = scalar_lea.vmem %s2537_s10, 1024  ;;  %p2539_p13 = scmp.lt.s32.totalorder %s3189_s3, %s2537_s10 }
  0x93   : > { %p2534_p5 = pnand %p2532_p8, %p3080_p6  ;;  %p2540_p9 = scmp.lt.s32.totalorder %s2538_s16, %s2531_s4 }
  0x95   : > { %p2535_p7 = pneg %p2534_p5  ;;  %p2541_p0 = por %p2540_p9, %p2539_p13 }
  0x97   : > { %p2542_p2 = pnand %p2541_p0, %p2535_p7 }
  0x99   : > { %2545 = shalt.err (!%p2542_p2)
}
  0x9a   : > { %2273 = dma.hbm_to_vmem [thread:$0]  (!%p3813_p3), %s3185_s11, 512, %s3189_s3, %s3773_s5, %s3817_s8, %s3817_s8, %s3816_s6  }
  0x9b   : > { %s3819_s9 = sld [smem:[#allocation52_spill]]  ;;  %s557_s0 = scalar_lea.vmem [#allocation20], %s3052_s29 }
  0x9c   : > { %s564_s4 = sshll.u32 %s557_s0, 4  ;;  %s3776_s23 = scalar_lea.sflag [#allocation21], %s3049_s28  ;;  %s565_s4 = int_to_ptr.vmem [resolvable:$true] %s564_s4 }
  0xa1   : > { %s3222_s1 = scalar_lea.hbm %s3819_s9, %s3115_s14  ;;  %s2551_s11 = scalar_lea.hbm %s3819_s9, 32 }
  0xa2   : > { %s2546_s10 = scalar_lea.hbm %s3222_s1, 16  ;;  %p2552_p1 = scmp.lt.u32.totalorder %s3222_s1, %s3819_s9 }
  0xa3   : > { %p2547_p10 = scmp.ne.s32.totalorder %s3222_s1, %s2546_s10  ;;  %p2553_p4 = scmp.lt.u32.totalorder %s2551_s11, %s2546_s10 }
  0xa4   : > { %p2555_p5 = scmp.lt.u32.totalorder %s2546_s10, %s3222_s1 }
  0xa5   : > { %p2549_p11 = pnand %p2547_p10, %p3080_p6  ;;  %p2554_p8 = por %p2553_p4, %p2552_p1 }
  0xa7   : > { %p2550_p12 = pneg %p2549_p11  ;;  %p2556_p7 = por %p2555_p5, %p2554_p8 }
  0xa9   : > { %p2557_p13 = pnand %p2556_p7, %p2550_p12 }
  0xab   : > { %2560 = shalt.err (!%p2557_p13)
}
  0xac   : > { %s2561_s0 = scalar_lea.vmem %s565_s4, 16  ;;  %s2906_s5 = smov [#allocation20]  }
  0xad   : > { %p2562_p9 = scmp.ne.s32.totalorder %s565_s4, %s2561_s0  ;;  %s2566_s2 = sshll.u32 %s2906_s5, 4  ;;  %s2567_s2 = int_to_ptr.vmem [resolvable:$false] %s2566_s2 }
  0xae   : > { %s2568_s16 = scalar_lea.vmem %s2567_s2, 32  ;;  %p2569_p10 = scmp.lt.s32.totalorder %s565_s4, %s2567_s2 }
  0xaf   : > { %p2564_p0 = pnand %p2562_p9, %p3080_p6  ;;  %p2570_p11 = scmp.lt.s32.totalorder %s2568_s16, %s2561_s0 }
  0xb1   : > { %p2565_p2 = pneg %p2564_p0  ;;  %p2571_p3 = por %p2570_p11, %p2569_p10 }
  0xb3   : > { %p2572_p1 = pnand %p2571_p3, %p2565_p2 }
  0xb5   : > { %2575 = shalt.err (!%p2572_p1)
}
  0xb6   : > { %p3820_p4 = scmp.ne.s32.totalorder %s3807_s24, 0  ;;  %s3246_s5 = sadd.s32 4294967295, %s2898_s27  }
  0xb7   : > { %s2014_s2 = sadd.s32 4294967294, %s2898_s27   ;;  %s51_s10 = sadd.s32 1, %s2890_s25 }
  0xb8   : > { %2279 = dma.hbm_to_vmem [thread:$0]  (!%p3820_p4), %s3222_s1, 16, %s565_s4, %s3776_s23  }
  0xb9   : > { %s54_s3 = sadd.s32 1, %s2894_s26  ;;  %p52_p3 = scmp.ge.s32.totalorder %s51_s10, 2 }
  0xba   : > { %s61_s11 = sadd.s32 1, %s2878_s22  ;;  %p68_p12 = scmp.ne.s32.totalorder %s2878_s22, %s2874_s21 }
  0xbb   : > { %p74_p8 = scmp.ne.s32.totalorder %s2874_s21, %s2870_s20  ;;  %s3876_s10 = smov (%p52_p3, %s51_s10), 0 }
  0xbc   : > { %3821 = sst [smem:[#allocation39_spill]] %s3876_s10  ;;  %s3878_s3 = smov (!%p52_p3, %s54_s3), %s2894_s26 }
  0xbd   : > { %p3822_p5 = scmp.eq.s32.totalorder %s2898_s27, 0  ;;  %p75_p13 = scmp.eq.s32.totalorder %s3246_s5, 0 }
  0xbe   : > { %p56_p9 = scmp.ge.s32.totalorder %s3878_s3, 2  ;;  %s84_s4 = ssub.s32 %s2890_s25, %s3876_s10 }
  0xbf   : > { %p3264_p7 = por %p3822_p5, %p68_p12  ;;  %p3274_p0 = por %p75_p13, %p74_p8 }
  0xc0   : > { %p85_p2 = scmp.eq.s32.totalorder %s84_s4, 0  ;;  %s3880_s3 = smov (%p56_p9, %s3878_s3), 0 }
  0xc1   : > { %s3824_s30 = scalar_select %p3274_p0, 1, 0 }
  0xc2   : > { %3825 = sst [smem:[#allocation40_spill]] %s3880_s3  ;;  %s87_s15 = sadd.s32 1, %s2866_s19 }
  0xc3   : > { %p100_p10 = scmp.ne.s32.totalorder %s2862_s18, %s2858_s17  ;;  %s58_s0 = ssub.s32 %s2894_s26, %s3880_s3 }
  0xc4   : > { %p358_p11 = scmp.eq.s32.totalorder %s3246_s5, 3  ;;  %p59_p1 = scmp.eq.s32.totalorder %s58_s0, 0 }
  0xc5   : > { %p3286_p3 = por %p100_p10, %p75_p13  ;;  %p364_p9 = scmp.eq.s32.totalorder %s2014_s2, 3 }
  0xc6   : > { %s3291_s23 = scalar_select %p85_p2, %s2866_s19, %s87_s15  }
  0xc7   : > { %s3826_s16 = scalar_select %p3286_p3, 1, 0 }
  0xc8   : > { %3827 = sst [smem:[#allocation41_spill]] %s3291_s23  ;;  %p3299_p5 = por %p358_p11, %p68_p12 }
  0xc9   : > { %s3294_s7 = scalar_select %p59_p1, %s2878_s22, %s61_s11  }
  0xca   : > { %s3829_s4 = scalar_select %p3299_p5, 1, 0 }
  0xcb   : > { %3828 = sst [smem:[#allocation42_spill]] %s3294_s7  ;;  %s384_s9 = sand.u32 1, %s2878_s22  }
  0xcc   : > { %s2018_s10 = sshll.u32 %s2894_s26, 7  ;;  %p3308_p0 = por %p364_p9, %p74_p8 }
  0xcd   : > { %s2017_s0 = sshll.u32 %s384_s9, 3  ;;  %s3831_s15 = sld [smem:[#allocation43_spill]] }
  0xce   : > { %s3830_s17 = scalar_select %p3308_p0, 1, 0 }
  0xcf   : > { %p3832_p13 = scmp.lt.s32.totalorder %s2898_s27, 4  ;;  %s388_s11 = scalar_lea.vmem [#allocation5], %s2017_s0 }
  0xd0   : > { %s395_s26 = sshll.u32 %s388_s11, 4  ;;  %s385_s7 = scalar_lea.sflag [#allocation6], %s384_s9  ;;  %s3325_s26 = int_to_ptr.vmem [resolvable:$true] %s395_s26 }
  0xd1   : > { %p3321_p12 = pnand %p3832_p13, %p3264_p7 }
  0xd3   : > { %s3315_s23 = scalar_lea.hbm %s3831_s15, %s2018_s10  ;;  %p2578_p2 = pneg %p3321_p12 }
  0xd4   : > { %s2576_s25 = scalar_lea.hbm %s3315_s23, 128  ;;  %s2581_s1 = scalar_lea.hbm %s3831_s15, 256 }
  0xd5   : > { %p2577_p8 = scmp.ne.s32.totalorder %s3315_s23, %s2576_s25  ;;  %p2582_p7 = scmp.lt.u32.totalorder %s3315_s23, %s3831_s15 }
  0xd6   : > { %p2583_p1 = scmp.lt.u32.totalorder %s2581_s1, %s2576_s25  ;;  %p2585_p13 = scmp.lt.u32.totalorder %s2576_s25, %s3315_s23 }
  0xd7   : > { %p2579_p10 = pnand %p2578_p2, %p2577_p8 }
  0xd8   : > { %p2584_p9 = por %p2583_p1, %p2582_p7 }
  0xd9   : > { %p2580_p11 = pneg %p2579_p10 }
  0xda   : > { %p2586_p0 = por %p2585_p13, %p2584_p9 }
  0xdc   : > { %p2587_p5 = pnand %p2586_p0, %p2580_p11 }
  0xde   : > { %2590 = shalt.err (!%p2587_p5)
}
  0xdf   : > { %s2591_s9 = scalar_lea.vmem %s3325_s26, 128  ;;  %s2907_s0 = smov [#allocation5]  }
  0xe0   : > { %p2592_p8 = scmp.ne.s32.totalorder %s3325_s26, %s2591_s9  ;;  %s2596_s11 = sshll.u32 %s2907_s0, 4  ;;  %s2597_s11 = int_to_ptr.vmem [resolvable:$false] %s2596_s11 }
  0xe1   : > { %s2598_s19 = scalar_lea.vmem %s2597_s11, 256  ;;  %p2599_p4 = scmp.lt.s32.totalorder %s3325_s26, %s2597_s11 }
  0xe2   : > { %p2594_p10 = pnand %p2592_p8, %p2578_p2  ;;  %p2600_p7 = scmp.lt.s32.totalorder %s2598_s19, %s2591_s9 }
  0xe4   : > { %p2595_p3 = pneg %p2594_p10  ;;  %p2601_p1 = por %p2600_p7, %p2599_p4 }
  0xe6   : > { %p2602_p9 = pnand %p2601_p1, %p2595_p3 }
  0xe8   : > { %2605 = shalt.err (!%p2602_p9)
}
  0xe9   : > { %s3834_s22 = sld [smem:[#allocation37_spill]]  ;;  %s3835_s3 = sld [smem:[#allocation45_spill]] }
  0xea   : > { %2252 = dma.hbm_to_vmem [thread:$0]  (!%p3321_p12), %s3315_s23, 128, %s3325_s26, %s385_s7  }
  0xef   : > { %s3356_s1 = scalar_lea.hbm %s3835_s3, %s3058_s12  ;;  %s427_s9 = scalar_lea.vmem [#allocation10], %s3834_s22 }
  0xf0   : > { %s434_s0 = sshll.u32 %s427_s9, 4  ;;  %s2606_s2 = scalar_lea.hbm %s3356_s1, 256  ;;  %s3359_s0 = int_to_ptr.vmem [resolvable:$true] %s434_s0 }
  0xf1   : > { %p2607_p4 = scmp.ne.s32.totalorder %s3356_s1, %s2606_s2  ;;  %s2611_s26 = scalar_lea.hbm %s3835_s3, 512 }
  0xf2   : > { %p2612_p5 = scmp.lt.u32.totalorder %s3356_s1, %s3835_s3  ;;  %p2613_p12 = scmp.lt.u32.totalorder %s2611_s26, %s2606_s2 }
  0xf3   : > { %p2609_p0 = pnand %p2607_p4, %p3080_p6  ;;  %p2615_p11 = scmp.lt.u32.totalorder %s2606_s2, %s3356_s1 }
  0xf4   : > { %p2614_p2 = por %p2613_p12, %p2612_p5 }
  0xf5   : > { %p2610_p3 = pneg %p2609_p0 }
  0xf6   : > { %p2616_p13 = por %p2615_p11, %p2614_p2 }
  0xf8   : > { %p2617_p8 = pnand %p2616_p13, %p2610_p3 }
  0xfa   : > { %2620 = shalt.err (!%p2617_p8)
}
  0xfb   : > { %s2621_s19 = scalar_lea.vmem %s3359_s0, 256  ;;  %s2908_s22 = smov [#allocation10]  }
  0xfc   : > { %p2622_p10 = scmp.ne.s32.totalorder %s3359_s0, %s2621_s19  ;;  %s2626_s25 = sshll.u32 %s2908_s22, 4  ;;  %s2627_s25 = int_to_ptr.vmem [resolvable:$false] %s2626_s25 }
  0xfd   : > { %s2628_s10 = scalar_lea.vmem %s2627_s25, 512  ;;  %p2629_p9 = scmp.lt.s32.totalorder %s3359_s0, %s2627_s25 }
  0xfe   : > { %p2624_p7 = pnand %p2622_p10, %p3080_p6  ;;  %p2630_p4 = scmp.lt.s32.totalorder %s2628_s10, %s2621_s19 }
 0x100   : > { %p2625_p1 = pneg %p2624_p7  ;;  %p2631_p0 = por %p2630_p4, %p2629_p9 }
 0x102   : > { %p2632_p5 = pnand %p2631_p0, %p2625_p1 }
 0x104   : > { %2635 = shalt.err (!%p2632_p5)
}
 0x105   : > { %p3836_p3 = scmp.ne.s32.totalorder %s3807_s24, 0  ;;  %s3837_s9 = scalar_lea.sflag [#allocation9], %s3049_s28 }
 0x106   : > { %s3838_s7 = sld [smem:[#allocation47_spill]]  ;;  %s464_s23 = scalar_lea.vmem [#allocation13], %s3052_s29 }
 0x107   : > { %2258 = dma.hbm_to_vmem [thread:$0]  (!%p3836_p3), %s3356_s1, 256, %s3359_s0, %s3837_s9, %s3817_s8, %s3817_s8, %s3816_s6  }
 0x108   : > { %s471_s12 = sshll.u32 %s464_s23, 4  ;;  %s472_s12 = int_to_ptr.vmem [resolvable:$true] %s471_s12 }
 0x10c   : > { %s3391_s26 = scalar_lea.hbm %s3838_s7, %s3115_s14  ;;  %s2641_s6 = scalar_lea.hbm %s3838_s7, 32 }
 0x10d   : > { %s2636_s19 = scalar_lea.hbm %s3391_s26, 16  ;;  %p2642_p13 = scmp.lt.u32.totalorder %s3391_s26, %s3838_s7 }
 0x10e   : > { %p2637_p12 = scmp.ne.s32.totalorder %s3391_s26, %s2636_s19  ;;  %p2643_p8 = scmp.lt.u32.totalorder %s2641_s6, %s2636_s19 }
 0x10f   : > { %p2645_p7 = scmp.lt.u32.totalorder %s2636_s19, %s3391_s26 }
 0x110   : > { %p2639_p2 = pnand %p2637_p12, %p3080_p6  ;;  %p2644_p10 = por %p2643_p8, %p2642_p13 }
 0x112   : > { %p2640_p11 = pneg %p2639_p2  ;;  %p2646_p1 = por %p2645_p7, %p2644_p10 }
 0x114   : > { %p2647_p9 = pnand %p2646_p1, %p2640_p11 }
 0x116   : > { %2650 = shalt.err (!%p2647_p9)
}
 0x117   : > { %s2651_s0 = scalar_lea.vmem %s472_s12, 16  ;;  %s2909_s10 = smov [#allocation13]  }
 0x118   : > { %p2652_p4 = scmp.ne.s32.totalorder %s472_s12, %s2651_s0  ;;  %s2656_s9 = sshll.u32 %s2909_s10, 4  ;;  %s2657_s9 = int_to_ptr.vmem [resolvable:$false] %s2656_s9 }
 0x119   : > { %s2658_s2 = scalar_lea.vmem %s2657_s9, 32  ;;  %p2659_p12 = scmp.lt.s32.totalorder %s472_s12, %s2657_s9 }
 0x11a   : > { %p2654_p0 = pnand %p2652_p4, %p3080_p6  ;;  %p2660_p2 = scmp.lt.s32.totalorder %s2658_s2, %s2651_s0 }
 0x11c   : > { %p2655_p5 = pneg %p2654_p0  ;;  %p2661_p3 = por %p2660_p2, %p2659_p12 }
 0x11e   : > { %p2662_p8 = pnand %p2661_p3, %p2655_p5 }
 0x120   : > { %2665 = shalt.err (!%p2662_p8)
}
 0x121   : > { %p3839_p13 = scmp.ne.s32.totalorder %s3807_s24, 0  ;;  %s3840_s11 = scalar_lea.sflag [#allocation12], %s3049_s28 }
 0x122   : > { %s3841_s22 = sld [smem:[#allocation49_spill]]  ;;  %s502_s8 = scalar_lea.vmem [#allocation16], %s3052_s29 }
 0x123   : > { %2264 = dma.hbm_to_vmem [thread:$0]  (!%p3839_p13), %s3391_s26, 16, %s472_s12, %s3840_s11  }
 0x124   : > { %s509_s1 = sshll.u32 %s502_s8, 4  ;;  %s510_s1 = int_to_ptr.vmem [resolvable:$true] %s509_s1 }
 0x128   : > { %s3842_s6 = smov %s3841_s22  ;;  %s3417_s25 = scalar_lea.hbm %s3841_s22, %s3115_s14 }
 0x129   : > { %s2666_s0 = scalar_lea.hbm %s3417_s25, 16  ;;  %s2671_s26 = scalar_lea.hbm %s3842_s6, 32 }
 0x12a   : > { %p2667_p3 = scmp.ne.s32.totalorder %s3417_s25, %s2666_s0  ;;  %p2672_p7 = scmp.lt.u32.totalorder %s3417_s25, %s3842_s6 }
 0x12b   : > { %p2673_p1 = scmp.lt.u32.totalorder %s2671_s26, %s2666_s0  ;;  %p2675_p4 = scmp.lt.u32.totalorder %s2666_s0, %s3417_s25 }
 0x12c   : > { %p2669_p11 = pnand %p2667_p3, %p3080_p6 }
 0x12d   : > { %p2674_p9 = por %p2673_p1, %p2672_p7 }
 0x12e   : > { %p2670_p10 = pneg %p2669_p11 }
 0x12f   : > { %p2676_p0 = por %p2675_p4, %p2674_p9 }
 0x131   : > { %p2677_p5 = pnand %p2676_p0, %p2670_p10 }
 0x133   : > { %2680 = shalt.err (!%p2677_p5)
}
 0x134   : > { %s2681_s11 = scalar_lea.vmem %s510_s1, 16  ;;  %s2910_s23 = smov [#allocation16]  }
 0x135   : > { %p2682_p12 = scmp.ne.s32.totalorder %s510_s1, %s2681_s11  ;;  %s2686_s19 = sshll.u32 %s2910_s23, 4  ;;  %s2687_s19 = int_to_ptr.vmem [resolvable:$false] %s2686_s19 }
 0x136   : > { %s2688_s22 = scalar_lea.vmem %s2687_s19, 32  ;;  %p2689_p3 = scmp.lt.s32.totalorder %s510_s1, %s2687_s19 }
 0x137   : > { %p2684_p2 = pnand %p2682_p12, %p3080_p6  ;;  %p2690_p11 = scmp.lt.s32.totalorder %s2688_s22, %s2681_s11 }
 0x139   : > { %p2685_p8 = pneg %p2684_p2  ;;  %p2691_p13 = por %p2690_p11, %p2689_p3 }
 0x13b   : > { %p2692_p1 = pnand %p2691_p13, %p2685_p8 }
 0x13d   : > { %2695 = shalt.err (!%p2692_p1)
}
 0x13e   : > { %p3843_p7 = scmp.ne.s32.totalorder %s3807_s24, 0  ;;  %s3844_s8 = scalar_lea.sflag [#allocation15], %s3049_s28 }
 0x13f   : > { %s3845_s9 = sld [smem:[#allocation51_spill]]  ;;  %s540_s12 = scalar_lea.vmem [#allocation19], %s3052_s29 }
 0x140   : > { %2270 = dma.hbm_to_vmem [thread:$0]  (!%p3843_p7), %s3417_s25, 16, %s510_s1, %s3844_s8  }
 0x141   : > { %s547_s2 = sshll.u32 %s540_s12, 4  ;;  %s548_s2 = int_to_ptr.vmem [resolvable:$true] %s547_s2 }
 0x145   : > { %s3443_s26 = scalar_lea.hbm %s3845_s9, %s3115_s14  ;;  %s2701_s25 = scalar_lea.hbm %s3845_s9, 32 }
 0x146   : > { %s2696_s11 = scalar_lea.hbm %s3443_s26, 16  ;;  %p2702_p4 = scmp.lt.u32.totalorder %s3443_s26, %s3845_s9 }
 0x147   : > { %p2697_p13 = scmp.ne.s32.totalorder %s3443_s26, %s2696_s11  ;;  %p2703_p0 = scmp.lt.u32.totalorder %s2701_s25, %s2696_s11 }
 0x148   : > { %p2705_p12 = scmp.lt.u32.totalorder %s2696_s11, %s3443_s26 }
 0x149   : > { %p2699_p10 = pnand %p2697_p13, %p3080_p6  ;;  %p2704_p5 = por %p2703_p0, %p2702_p4 }
 0x14b   : > { %p2700_p9 = pneg %p2699_p10  ;;  %p2706_p2 = por %p2705_p12, %p2704_p5 }
 0x14d   : > { %p2707_p8 = pnand %p2706_p2, %p2700_p9 }
 0x14f   : > { %2710 = shalt.err (!%p2707_p8)
}
 0x150   : > { %s2711_s8 = scalar_lea.vmem %s548_s2, 16  ;;  %s2911_s0 = smov [#allocation19]  }
 0x151   : > { %p2712_p3 = scmp.ne.s32.totalorder %s548_s2, %s2711_s8  ;;  %s2716_s10 = sshll.u32 %s2911_s0, 4  ;;  %s2717_s10 = int_to_ptr.vmem [resolvable:$false] %s2716_s10 }
 0x152   : > { %s2718_s12 = scalar_lea.vmem %s2717_s10, 32  ;;  %p2719_p13 = scmp.lt.s32.totalorder %s548_s2, %s2717_s10 }
 0x153   : > { %p2714_p11 = pnand %p2712_p3, %p3080_p6  ;;  %p2720_p10 = scmp.lt.s32.totalorder %s2718_s12, %s2711_s8 }
 0x155   : > { %p2715_p1 = pneg %p2714_p11  ;;  %p2721_p7 = por %p2720_p10, %p2719_p13 }
 0x157   : > { %p2722_p0 = pnand %p2721_p7, %p2715_p1 }
 0x159   : > { %2725 = shalt.err (!%p2722_p0)
}
 0x15a   : > { %p3846_p4 = scmp.ne.s32.totalorder %s3807_s24, 0  ;;  %s3847_s11 = scalar_lea.sflag [#allocation18], %s3049_s28 }
 0x15b   : > { %s3848_s25 = sld [smem:[#allocation53_spill]]  ;;  %s574_s8 = scalar_lea.vmem [#allocation22], %s3052_s29 }
 0x15c   : > { %2276 = dma.hbm_to_vmem [thread:$0]  (!%p3846_p4), %s3443_s26, 16, %s548_s2, %s3847_s11  }
 0x15d   : > { %s581_s0 = sshll.u32 %s574_s8, 4  ;;  %s582_s0 = int_to_ptr.vmem [resolvable:$true] %s581_s0 }
 0x161   : > { %s3849_s1 = smov %s3848_s25  ;;  %s3469_s22 = scalar_lea.hbm %s3848_s25, %s3115_s14 }
 0x162   : > { %s2726_s10 = scalar_lea.hbm %s3469_s22, 16  ;;  %s2731_s26 = scalar_lea.hbm %s3849_s1, 32 }
 0x163   : > { %p2727_p7 = scmp.ne.s32.totalorder %s3469_s22, %s2726_s10  ;;  %p2732_p12 = scmp.lt.u32.totalorder %s3469_s22, %s3849_s1 }
 0x164   : > { %p2733_p2 = scmp.lt.u32.totalorder %s2731_s26, %s2726_s10  ;;  %p2735_p3 = scmp.lt.u32.totalorder %s2726_s10, %s3469_s22 }
 0x165   : > { %p2729_p9 = pnand %p2727_p7, %p3080_p6 }
 0x166   : > { %p2734_p8 = por %p2733_p2, %p2732_p12 }
 0x167   : > { %p2730_p5 = pneg %p2729_p9 }
 0x168   : > { %p2736_p11 = por %p2735_p3, %p2734_p8 }
 0x16a   : > { %p2737_p1 = pnand %p2736_p11, %p2730_p5 }
 0x16c   : > { %2740 = shalt.err (!%p2737_p1)
}
 0x16d   : > { %s2741_s29 = scalar_lea.vmem %s582_s0, 16  ;;  %s2912_s14 = smov [#allocation22]  }
 0x16e   : > { %p2742_p13 = scmp.ne.s32.totalorder %s582_s0, %s2741_s29  ;;  %s2746_s23 = sshll.u32 %s2912_s14, 4  ;;  %s2747_s23 = int_to_ptr.vmem [resolvable:$false] %s2746_s23 }
 0x16f   : > { %s2748_s3 = scalar_lea.vmem %s2747_s23, 32  ;;  %p2749_p7 = scmp.lt.s32.totalorder %s582_s0, %s2747_s23 }
 0x170   : > { %p2744_p10 = pnand %p2742_p13, %p3080_p6  ;;  %p2750_p9 = scmp.lt.s32.totalorder %s2748_s3, %s2741_s29 }
 0x172   : > { %p2745_p0 = pneg %p2744_p10  ;;  %p2751_p4 = por %p2750_p9, %p2749_p7 }
 0x174   : > { %p2752_p2 = pnand %p2751_p4, %p2745_p0 }
 0x176   : > { %2755 = shalt.err (!%p2752_p2)
}
 0x177   : > { %p3850_p12 = scmp.ne.s32.totalorder %s3807_s24, 0  ;;  %s3851_s19 = scalar_lea.sflag [#allocation21], %s3049_s28 }
 0x178   : > { %s3852_s25 = sld [smem:[#allocation38_spill]] }
 0x179   : > { %2282 = dma.hbm_to_vmem [thread:$0]  (!%p3850_p12), %s3469_s22, 16, %s582_s0, %s3851_s19  }
 0x17e   : > { %p3853_p5 = scmp.ne.s32.totalorder %s3852_s25, 0 }
 0x17f   : > { %s3494_s13 = sand.u32 (!%p3853_p5), 1, %s2874_s21   ;;  %p3854_p6 = scmp.ne.s32.totalorder (!%p3853_p5), %s3824_s30, 0 }
 0x180   : > { %590 = sbr.rel (%p3853_p5) target bundleno = 4460 (0x116c), region = 64  ;;  %s2038_s8 = sshll.u32 (!%p3853_p5), %s3494_s13, 3 }
 0x181   : > { %s593_s10 = scalar_lea.sflag (!%p3853_p5), [#allocation6], %s3494_s13  ;;  %s3500_s12 = scalar_lea.vmem (!%p3853_p5), [#allocation5], %s2038_s8 }
 0x187   : > { %2829 = dma.done.wait (%p3854_p6), %s593_s10, 128  }
 0x188   : > { %2831 = vsyncadd (%p3854_p6), %s593_s10, 4294967168  ;;  %s601_s24 = sand.u32 1, %s3246_s5   ;;  %s3508_s28 = sand.u32 1, %s2862_s18  }
 0x189   : > { %s3511_s22 = sshll.u32 %s3508_s28, 4  ;;  %s602_s0 = scalar_lea.sflag [#allocation9], %s601_s24 }
 0x18a   : > { %s605_s26 = scalar_lea.vmem [#allocation8], %s3511_s22  ;;  %p3855_p4 = scmp.ne.s32.totalorder %s3826_s16, 0 }
 0x18c   : > { %2833 = dma.done.wait (%p3855_p4), %s602_s0, 512  }
 0x18d   : > { %2835 = vsyncadd (%p3855_p4), %s602_s0, 4294966784  ;;  %s3519_s30 = scalar_lea.vmem [#allocation10], %s3511_s22  ;;  %s620_s2 = scalar_lea.sflag [#allocation12], %s601_s24 }
 0x18e   : > { %s622_s5 = scalar_lea.vmem [#allocation11], %s3508_s28 }
 0x18f   : > { %2837 = dma.done.wait (%p3855_p4), %s620_s2, 32  }
 0x190   : > { %2839 = vsyncadd (%p3855_p4), %s620_s2, 4294967264  ;;  %s630_s11 = scalar_lea.vmem [#allocation13], %s3508_s28  ;;  %s636_s29 = scalar_lea.sflag [#allocation15], %s601_s24 }
 0x191   : > { %s639_s14 = scalar_lea.vmem [#allocation14], %s3511_s22 }
 0x192   : > { %2841 = dma.done.wait (%p3855_p4), %s636_s29, 272  }
 0x193   : > { %2843 = vsyncadd (%p3855_p4), %s636_s29, 4294967024  ;;  %s2042_s23 = sshll.u32 %s3508_s28, 5  ;;  %s653_s19 = scalar_lea.sflag [#allocation18], %s601_s24 }
 0x194   : > { %s3534_s25 = scalar_lea.vmem [#allocation17], %s2042_s23 }
 0x195   : > { %2845 = dma.done.wait (%p3855_p4), %s653_s19, 528  }
 0x196   : > { %2847 = vsyncadd (%p3855_p4), %s653_s19, 4294966768  ;;  %s664_s10 = scalar_lea.vmem [#allocation19], %s3508_s28  ;;  %s670_s0 = scalar_lea.sflag [#allocation21], %s601_s24 }
 0x197   : > { %s672_s2 = scalar_lea.vmem [#allocation20], %s3508_s28 }
 0x198   : > { %2849 = dma.done.wait (%p3855_p4), %s670_s0, 32  }
 0x199   : > { %2851 = vsyncadd (%p3855_p4), %s670_s0, 4294967264  ;;  %s680_s29 = scalar_lea.vmem [#allocation22], %s3508_s28  ;;  %s3549_s23 = scalar_lea.vmem [#allocation23], %s2038_s8 }
 0x19a   : > { %s3856_s3 = sld [smem:[#allocation33_spill]] }
 0x1a0   : > { %p2044_p8 = scmp.ne.s32.totalorder %s3856_s3, 0 }
 0x1a1   : > { %v768_v0 = vld [vmem:[%s3500_s12] sm:$0xff] (!%p2044_p8)  ;;  %vm769_vm0 = vcmask (!%p2044_p8), 261120  }
 0x1a2   : > { %767 = sbr.rel (%p2044_p8) target bundleno = 425 (0x1a9), region = 112  ;;  %770 = vst.msk [vmem:[#allocation2] sm:$0xff] (!%p2044_p8), %vm769_vm0, %v768_v0 }
 0x1a9 PF: > { %v2392_v1 = vld [vmem:[%s605_s26] sm:$0xff]   ;;  %v2913_v2 = vmov 0.0   ;;  %v2393_v3 = vld [vmem:[%s605_s26 + $0x8] sm:$0xff]   ;;  %vm2914_vm1 = vmmov 0   ;;  %vm789_vm2 = vcmask 261120   ;;  %vm834_vm3 = vcmask 781312  }
 0x1aa   : > { %2125 = vmatprep.subr.bf16.mxu1 %v2913_v2  ;;  %2139 = vmatprep.subr.bf16.mxu0 %v2913_v2  ;;  %v3561_v4 = vld [vmem:[#allocation2] sm:$0xff]  ;;  %s2915_s16 = smov 64   ;;  %s2916_s8 = smov 96   ;;  %vm842_vm4 = vcmask 64512   ;;  %vm906_vm5 = vcmask 1043456   ;;  %vm1641_vm6 = vcmask 523264  }
 0x1ab   : > { %2126 = vmatpush3.bf16.msra.mxu1 %v2392_v1  ;;  %2129 = vmatprep.mubr.msk.bf16.mxu1 %vm2914_vm1, %v2913_v2  ;;  %v772_v5 = vpack.c.bf16 %v3561_v4, %v3561_v4  ;;  %s2917_s12 = smov 56   ;;  %s2918_s24 = smov 88   ;;  %v951_v28 = vld [vmem:[%s3519_s30] sm:$0xf] }
 0x1ac   : > { %2127 = vmatprep.subr.bf16.mxu1 %v2913_v2  ;;  %2141 = vmatprep.mubr.msk.bf16.mxu0 %vm2914_vm1, %v2913_v2  ;;  %s2919_s26 = smov 120   ;;  %v956_v29 = vsel %vm906_vm5, %v951_v28, 0  ;;  %s2920_s3 = smov 80  }
 0x1ad   : > { %s2921_s19 = smov 112   ;;  %s2922_s0 = smov 48  }
 0x1ae   : > { %s3857_s22 = scalar_lea.vmem [#allocation16], %s3508_s28 }
 0x1af   : > { %2128 = vmatpush3.bf16.msra.mxu1 %v2393_v3  ;;  %v2055_v3 = vld [vmem:[%s3519_s30 + $0x4] sm:$0xf] }
 0x1b0   : > { %2133 = vmatprep.subr.bf16.mxu1 %v2913_v2 }
 0x1b2   : > { %2130 = vmatmul.mubr.msk.bf16.vlgmr.msra.gmra.mrb[0].mxu1 %vm789_vm2, %v772_v5  ;;  %v1120_v5 = vsel %vm906_vm5, %v2055_v3, 0 }
 0x1b3   : > { %2135 = vmatprep.mubr.msk.bf16.mxu1 %vm2914_vm1, %v2913_v2 }
 0x285   : > { %v827_v6 = vpop.f32.mrb[0].mxu1 }
 0x286   : > { %v833_v7 = vpack.c.bf16 %v827_v6, %v827_v6  ;;  %v2131_v8 = vpop.f32.mrb[1].mxu1 }
 0x287   : > { %v830_v9 = vpop.f32.mrb[2].mxu1 }
 0x288   : > { %835 = vst.msk [vmem:[#allocation3] sm:$0xf] %vm834_vm3, %v833_v7  ;;  %v2132_v10 = vpop.f32.mrb[3].mxu1 }
 0x28f   : > { %v836_v11 = vld [vmem:[#allocation3] sm:$0xf] }
 0x290   : > { %v2048_v12 = vcombine.low %v836_v11, %v836_v11  ;;  %v2395_v22 = vld [vmem:[#allocation3] ss:$0 sps:$4 sm:$0xff]  }
 0x291   : > { %v2396_v54 = vld [vmem:[#allocation3] ss:$0 sps:$4 sm:$0xff]  }
 0x292   : > { %901 = vrot.lane.b32.xlu1 %v2048_v12, %s2915_s16  ;;  %840 = vrot.lane.b32.xlu0 %v2048_v12, %s2916_s8  ;;  %s2923_s16 = smov 72   ;;  %s2924_s8 = smov 104  }
 0x304   : > { %v902_v13 = vpop.permute.xlu1 %901  ;;  %v841_v14 = vpop.permute.xlu0 %840 }
 0x305   : > { %v847_v15 = vsel %vm842_vm4, %v841_v14, 0  ;;  %v908_v16 = vsel %vm906_vm5, %v902_v13, 0 }
 0x306   : > { %2134 = vmatpush3.bf16.xpose.msra.mxu1 %v847_v15  ;;  %2140 = vmatpush3.bf16.msra.mxu0 %v908_v16  ;;  %v2397_v16 = vld [vmem:[#allocation3] ss:$0 sps:$4 sm:$0xff]  }
 0x307   : > { %2151 = vmatprep.subr.bf16.mxu0 %v2913_v2  ;;  %2145 = vmatprep.subr.bf16.mxu1 %v2913_v2 }
 0x30d   : > { %2136 = vmatmul.mubr.msk.bf16.vlgmr.msra.gmra.mrb[4].mxu1 %vm842_vm4, %v836_v11 }
 0x30e   : > { %2147 = vmatprep.mubr.msk.bf16.mxu1 %vm2914_vm1, %v2913_v2  ;;  %2146 = vmatpush3.bf16.msra.mxu1 %v956_v29 }
 0x30f   : > { %2157 = vmatprep.subr.bf16.mxu1 %v2913_v2 }
 0x3e0   : > { %v883_v17 = vpop.f32.mrb[4].mxu1 }
 0x3e1   : > { %v2137_v18 = vpop.f32.mrb[5].mxu1  ;;  %v889_v19 = vsel %vm842_vm4, %v883_v17, -inf }
 0x3e2   : > { %890 = vmax.xlane.f32.xlu0 %v889_v19  ;;  %v886_v20 = vpop.f32.mrb[6].mxu1 }
 0x3e3   : > { %v2138_v21 = vpop.f32.mrb[7].mxu1 }
 0x3f8   : > { %1065 = vrot.lane.b32.xlu0 %v2395_v22, %s2917_s12  ;;  %s2925_s12 = smov 40  }
 0x46f   : > { %v891_v23 = vpop.xlane.xlu0 %890 }
 0x470   : > { %v892_v24 = vsub.f32 %v883_v17, %v891_v23 }
 0x472   : > { %v893_v25 = vmul.f32 1.442695, %v892_v24 }
 0x473   : > { %v1066_v37 = vpop.permute.xlu0 %1065 }
 0x474   : > { %2404 = vpow2.f32 %v893_v25  ;;  %v1071_v42 = vsel %vm906_vm5, %v1066_v37, 0  ;;  %v2060_v37 = vld [vmem:[%s3519_s30 + $0x8] sm:$0xf] }
 0x47e   : > { %v2405_v26 = vpop.eup %2404 }
 0x47f   : > { %v895_v27 = vsel %vm842_vm4, %v2405_v26, 0.0 }
 0x480   : > { %896 = vadd.xlane.f32.xlu1 %v895_v27 }
 0x491   : > { %1005 = vrot.lane.b32.xlu1 %v2395_v22, %s2918_s24 }
 0x495   : > { %1003 = vrot.lane.b32.xlu1 %v2395_v22, %s2919_s26 }
 0x50d   : > { %v897_v30 = vpop.xlane.xlu1 %896 }
 0x50e   : > { %2406 = vrcp.f32 %v897_v30 }
 0x511   : > { %v1006_v33 = vpop.permute.xlu1 %1005 }
 0x512   : > { %v1011_v35 = vsel %vm842_vm4, %v1006_v33, 0 }
 0x515   : > { %v1004_v36 = vpop.permute.xlu1 %1003 }
 0x518   : > { %v2407_v31 = vpop.eup %2406 }
 0x519   : > { %v899_v32 = vmul.f32 %v2407_v31, %v2405_v26 }
 0x51b   : > { %v900_v34 = vpack.c.bf16 %v899_v32, %v899_v32 }
 0x51d   : > { %2142 = vmatmul.mubr.msk.bf16.vlgmr.msra.gmra.mrb[0].mxu0 %vm842_vm4, %v900_v34 }
 0x51e   : > { %2152 = vmatpush3.bf16.xpose.msra.mxu0 %v1011_v35  ;;  %2153 = vmatprep.mubr.msk.bf16.mxu0 %vm2914_vm1, %v2913_v2 }
 0x51f   : > { %2163 = vmatprep.subr.bf16.mxu0 %v2913_v2 }
 0x525   : > { %2154 = vmatmul.mubr.msk.bf16.vlgmr.msra.gmra.mrb[4].mxu0 %vm842_vm4, %v1004_v36 }
 0x526   : > { %2165 = vmatprep.mubr.msk.bf16.mxu0 %vm2914_vm1, %v2913_v2  ;;  %2164 = vmatpush3.bf16.msra.mxu0 %v1120_v5 }
 0x527   : > { %2175 = vmatprep.subr.bf16.mxu0 %v2913_v2 }
 0x5f0   : > { %v944_v38 = vpop.f32.mrb[0].mxu0 }
 0x5f1   : > { %v950_v39 = vpack.c.bf16 %v944_v38, %v944_v38  ;;  %v2143_v40 = vpop.f32.mrb[1].mxu0  ;;  %v1286_v38 = vsel %vm906_vm5, %v2060_v37, 0  ;;  %v2401_v37 = vld [vmem:[%s3534_s25 + $0x8] sm:$0xff]  }
 0x5f2   : > { %v947_v41 = vpop.f32.mrb[2].mxu0 }
 0x5f3   : > { %v2144_v43 = vpop.f32.mrb[3].mxu0  ;;  %2148 = vmatmul.mubr.msk.bf16.vlgmr.msra.gmra.mrb[8].mxu1 %vm842_vm4, %v950_v39 }
 0x5f4   : > { %2158 = vmatpush3.bf16.msra.mxu1 %v1071_v42  ;;  %2159 = vmatprep.mubr.msk.bf16.mxu1 %vm2914_vm1, %v2913_v2 }
 0x5f5   : > { %2169 = vmatprep.subr.bf16.mxu1 %v2913_v2 }
 0x5f8   : > { %v1047_v44 = vpop.f32.mrb[4].mxu0 }
 0x5f9   : > { %v2155_v45 = vpop.f32.mrb[5].mxu0  ;;  %v1053_v46 = vsel %vm842_vm4, %v1047_v44, -inf }
 0x5fa   : > { %1054 = vmax.xlane.f32.xlu1 %v1053_v46  ;;  %v1050_v47 = vpop.f32.mrb[6].mxu0 }
 0x5fb   : > { %v2156_v48 = vpop.f32.mrb[7].mxu0 }
 0x687   : > { %v1055_v49 = vpop.xlane.xlu1 %1054 }
 0x688   : > { %v1056_v50 = vsub.f32 %v1047_v44, %v1055_v49 }
 0x68a   : > { %v1057_v51 = vmul.f32 1.442695, %v1056_v50 }
 0x68c   : > { %2408 = vpow2.f32 %v1057_v51 }
 0x696   : > { %v2409_v52 = vpop.eup %2408 }
 0x697   : > { %v1059_v53 = vsel %vm842_vm4, %v2409_v52, 0.0 }
 0x698   : > { %1060 = vadd.xlane.f32.xlu0 %v1059_v53 }
 0x6ae   : > { %1171 = vrot.lane.b32.xlu0 %v2396_v54, %s2920_s3 }
 0x6b2   : > { %1169 = vrot.lane.b32.xlu0 %v2396_v54, %s2921_s19 }
 0x6c6   : > { %v992_v55 = vpop.f32.mrb[8].mxu1 }
 0x6c7   : > { %998 = vst.msk [vmem:[#allocation4] sm:$0xff] %vm789_vm2, %v992_v55  ;;  %v2149_v56 = vpop.f32.mrb[9].mxu1 }
 0x6c8   : > { %v995_v57 = vpop.f32.mrb[10].mxu1 }
 0x6c9   : > { %v2150_v58 = vpop.f32.mrb[11].mxu1 }
 0x6ce   : > { %v1162_v25 = vld [vmem:[#allocation4] sm:$0xff] }
 0x725   : > { %v1061_v59 = vpop.xlane.xlu0 %1060 }
 0x726   : > { %2410 = vrcp.f32 %v1061_v59 }
 0x729   : > { %v1172_v62 = vpop.permute.xlu0 %1171 }
 0x72a   : > { %v1177_v0 = vsel %vm842_vm4, %v1172_v62, 0 }
 0x72d   : > { %v1170_v1 = vpop.permute.xlu0 %1169 }
 0x730   : > { %v2411_v60 = vpop.eup %2410 }
 0x731   : > { %v1063_v61 = vmul.f32 %v2411_v60, %v2409_v52 }
 0x733   : > { %v1064_v63 = vpack.c.bf16 %v1063_v61, %v1063_v61 }
 0x735   : > { %2160 = vmatmul.mubr.msk.bf16.vlgmr.msra.gmra.mrb[12].mxu1 %vm842_vm4, %v1064_v63 }
 0x736   : > { %2170 = vmatpush3.bf16.xpose.msra.mxu1 %v1177_v0  ;;  %2171 = vmatprep.mubr.msk.bf16.mxu1 %vm2914_vm1, %v2913_v2 }
 0x737   : > { %2181 = vmatprep.subr.bf16.mxu1 %v2913_v2 }
 0x73d   : > { %2172 = vmatmul.mubr.msk.bf16.vlgmr.msra.gmra.mrb[16].mxu1 %vm842_vm4, %v1170_v1 }
 0x73e   : > { %2183 = vmatprep.mubr.msk.bf16.mxu1 %vm2914_vm1, %v2913_v2  ;;  %2182 = vmatpush3.bf16.msra.mxu1 %v1286_v38  ;;  %v2402_v38 = vld [vmem:[%s3534_s25 + $0x10] sm:$0xff]  }
 0x73f   : > { %2193 = vmatprep.subr.bf16.mxu1 %v2913_v2 }
 0x808   : > { %v1107_v6 = vpop.f32.mrb[12].mxu1 }
 0x809   : > { %v1113_v7 = vpack.c.bf16 %v1107_v6, %v1107_v6  ;;  %v2161_v8 = vpop.f32.mrb[13].mxu1 }
 0x80a   : > { %v1110_v9 = vpop.f32.mrb[14].mxu1 }
 0x80b   : > { %v2162_v10 = vpop.f32.mrb[15].mxu1  ;;  %2166 = vmatmul.mubr.msk.bf16.vlgmr.msra.gmra.mrb[8].mxu0 %vm842_vm4, %v1113_v7 }
 0x80c   : > { %2177 = vmatprep.mubr.msk.bf16.mxu0 %vm2914_vm1, %v2913_v2 }
 0x810   : > { %v1213_v11 = vpop.f32.mrb[16].mxu1 }
 0x811   : > { %v2173_v12 = vpop.f32.mrb[17].mxu1  ;;  %v1219_v13 = vsel %vm842_vm4, %v1213_v11, -inf }
 0x812   : > { %1220 = vmax.xlane.f32.xlu1 %v1219_v13  ;;  %v1216_v14 = vpop.f32.mrb[18].mxu1 }
 0x813   : > { %v2174_v15 = vpop.f32.mrb[19].mxu1 }
 0x823   : > { %1231 = vrot.lane.b32.xlu1 %v2396_v54, %s2922_s0  ;;  %v2065_v54 = vld [vmem:[%s3519_s30 + $0xc] sm:$0xf]  ;;  %s3858_s30 = sld [smem:[#allocation33_spill]] }
 0x824   : > { %v1452_v55 = vsel %vm906_vm5, %v2065_v54, 0 }
 0x827   : > { %1337 = vrot.lane.b32.xlu1 %v2397_v16, %s2923_s16 }
 0x829   : > { %p2081_p3 = scmp.ne.s32.totalorder %s3858_s30, 1 }
 0x82b   : > { %1335 = vrot.lane.b32.xlu1 %v2397_v16, %s2924_s8 }
 0x89f   : > { %v1221_v17 = vpop.xlane.xlu1 %1220 }
 0x8a0   : > { %v1222_v18 = vsub.f32 %v1213_v11, %v1221_v17 }
 0x8a2   : > { %v1223_v19 = vmul.f32 1.442695, %v1222_v18 }
 0x8a3   : > { %v1232_v20 = vpop.permute.xlu1 %1231 }
 0x8a4   : > { %2412 = vpow2.f32 %v1223_v19  ;;  %v1237_v21 = vsel %vm906_vm5, %v1232_v20, 0 }
 0x8a5   : > { %2176 = vmatpush3.bf16.msra.mxu0 %v1237_v21 }
 0x8a6   : > { %2187 = vmatprep.subr.bf16.mxu0 %v2913_v2 }
 0x8a7   : > { %v1338_v33 = vpop.permute.xlu1 %1337 }
 0x8a8   : > { %v1343_v35 = vsel %vm842_vm4, %v1338_v33, 0 }
 0x8ab   : > { %v1336_v36 = vpop.permute.xlu1 %1335 }
 0x8ae   : > { %v2413_v22 = vpop.eup %2412 }
 0x8af   : > { %v1225_v23 = vsel %vm842_vm4, %v2413_v22, 0.0 }
 0x8b0   : > { %1226 = vadd.xlane.f32.xlu0 %v1225_v23 }
 0x8de   : > { %v1156_v24 = vpop.f32.mrb[8].mxu0 }
 0x8df   : > { %v1163_v26 = vadd.f32 %v1162_v25, %v1156_v24  ;;  %v2167_v27 = vpop.f32.mrb[9].mxu0  ;;  %v2398_v25 = vld [vmem:[%s639_s14] sm:$0xff]  }
 0x8e0   : > { %v1159_v28 = vpop.f32.mrb[10].mxu0 }
 0x8e1   : > { %1164 = vst.msk [vmem:[#allocation4] sm:$0xff] %vm789_vm2, %v1163_v26  ;;  %v2168_v29 = vpop.f32.mrb[11].mxu0  ;;  %v2399_v26 = vld [vmem:[%s639_s14 + $0x8] sm:$0xff]  }
 0x8e8   : > { %v1328_v57 = vld [vmem:[#allocation4] sm:$0xff] }
 0x93d   : > { %v1227_v30 = vpop.xlane.xlu0 %1226 }
 0x93e   : > { %2414 = vrcp.f32 %v1227_v30  ;;  %v2067_v30 = vld [vmem:[%s622_s5] ss:$0 sm:$0xff] }
 0x948   : > { %v2415_v31 = vpop.eup %2414 }
 0x949   : > { %v1229_v32 = vmul.f32 %v2415_v31, %v2413_v22 }
 0x94b   : > { %v1230_v34 = vpack.c.bf16 %v1229_v32, %v1229_v32  ;;  %v2068_v32 = vld [vmem:[%s630_s11] ss:$0 sm:$0xff] }
 0x94d   : > { %2178 = vmatmul.mubr.msk.bf16.vlgmr.msra.gmra.mrb[12].mxu0 %vm842_vm4, %v1230_v34 }
 0x94e   : > { %2188 = vmatpush3.bf16.xpose.msra.mxu0 %v1343_v35  ;;  %2189 = vmatprep.mubr.msk.bf16.mxu0 %vm2914_vm1, %v2913_v2 }
 0x94f   : > { %2199 = vmatprep.subr.bf16.mxu0 %v2913_v2 }
 0x955   : > { %2190 = vmatmul.mubr.msk.bf16.vlgmr.msra.gmra.mrb[16].mxu0 %vm842_vm4, %v1336_v36  ;;  %v2400_v36 = vld [vmem:[%s3534_s25] sm:$0xff]  }
 0x956   : > { %2201 = vmatprep.mubr.msk.bf16.mxu0 %vm2914_vm1, %v2913_v2  ;;  %2200 = vmatpush3.bf16.msra.mxu0 %v1452_v55 }
 0x957   : > { %2213 = vmatprep.subr.bf16.mxu0 %v2913_v2 }
 0xa20   : > { %v1273_v39 = vpop.f32.mrb[12].mxu0 }
 0xa21   : > { %v1279_v40 = vpack.c.bf16 %v1273_v39, %v1273_v39  ;;  %v2179_v41 = vpop.f32.mrb[13].mxu0  ;;  %v2403_v39 = vld [vmem:[%s3534_s25 + $0x18] sm:$0xff]  }
 0xa22   : > { %v1276_v42 = vpop.f32.mrb[14].mxu0 }
 0xa23   : > { %v2180_v43 = vpop.f32.mrb[15].mxu0  ;;  %2184 = vmatmul.mubr.msk.bf16.vlgmr.msra.gmra.mrb[20].mxu1 %vm842_vm4, %v1279_v40  ;;  %v2069_v40 = vld [vmem:[%s3857_s22] ss:$0 sm:$0xff] }
 0xa24   : > { %2195 = vmatprep.mubr.msk.bf16.mxu1 %vm2914_vm1, %v2913_v2 }
 0xa28   : > { %v1379_v44 = vpop.f32.mrb[16].mxu0 }
 0xa29   : > { %v2191_v45 = vpop.f32.mrb[17].mxu0  ;;  %v1385_v46 = vsel %vm842_vm4, %v1379_v44, -inf }
 0xa2a   : > { %1386 = vmax.xlane.f32.xlu1 %v1385_v46  ;;  %v1382_v47 = vpop.f32.mrb[18].mxu0 }
 0xa2b   : > { %v2192_v48 = vpop.f32.mrb[19].mxu0 }
 0xab7   : > { %v1387_v49 = vpop.xlane.xlu1 %1386 }
 0xab8   : > { %v1388_v50 = vsub.f32 %v1379_v44, %v1387_v49 }
 0xaba   : > { %v1389_v51 = vmul.f32 1.442695, %v1388_v50 }
 0xabc   : > { %2416 = vpow2.f32 %v1389_v51 }
 0xac6   : > { %v2417_v52 = vpop.eup %2416 }
 0xac7   : > { %v1391_v53 = vsel %vm842_vm4, %v2417_v52, 0.0 }
 0xac8   : > { %1392 = vadd.xlane.f32.xlu0 %v1391_v53 }
 0xade   : > { %1397 = vrot.lane.b32.xlu0 %v2397_v16, %s2925_s12 }
 0xaf6   : > { %v1322_v56 = vpop.f32.mrb[20].mxu1 }
 0xaf7   : > { %v1329_v58 = vadd.f32 %v1328_v57, %v1322_v56  ;;  %v2185_v59 = vpop.f32.mrb[21].mxu1 }
 0xaf8   : > { %v1325_v60 = vpop.f32.mrb[22].mxu1 }
 0xaf9   : > { %1330 = vst.msk [vmem:[#allocation4] sm:$0xff] %vm789_vm2, %v1329_v58  ;;  %v2186_v61 = vpop.f32.mrb[23].mxu1 }
 0xb00   : > { %v1494_v12 = vld [vmem:[#allocation4] sm:$0xff] }
 0xb55   : > { %v1393_v62 = vpop.xlane.xlu0 %1392 }
 0xb56   : > { %2418 = vrcp.f32 %v1393_v62 }
 0xb59   : > { %v1398_v63 = vpop.permute.xlu0 %1397 }
 0xb5a   : > { %v1403_v0 = vsel %vm906_vm5, %v1398_v63, 0 }
 0xb5b   : > { %2194 = vmatpush3.bf16.msra.mxu1 %v1403_v0 }
 0xb5c   : > { %2205 = vmatprep.subr.bf16.mxu1 %v2913_v2 }
 0xb60   : > { %v2419_v1 = vpop.eup %2418 }
 0xb61   : > { %v1395_v3 = vmul.f32 %v2419_v1, %v2417_v52 }
 0xb63   : > { %v1396_v5 = vpack.c.bf16 %v1395_v3, %v1395_v3 }
 0xb65   : > { %2196 = vmatmul.mubr.msk.bf16.vlgmr.msra.gmra.mrb[24].mxu1 %vm842_vm4, %v1396_v5 }
 0xb66   : > { %2209 = vmatprep.mubr.msk.bf16.mxu1 %vm2914_vm1, %v2913_v2  ;;  %2206 = vmatpush3.bf16.msra.mxu1 %v2398_v25 }
 0xb67   : > { %2207 = vmatprep.subr.bf16.mxu1 %v2913_v2 }
 0xb6a   : > { %2208 = vmatpush3.bf16.msra.mxu1 %v2399_v26 }
 0xc38   : > { %v1439_v6 = vpop.f32.mrb[24].mxu1 }
 0xc39   : > { %v1445_v7 = vpack.c.bf16 %v1439_v6, %v1439_v6  ;;  %v2197_v8 = vpop.f32.mrb[25].mxu1  ;;  %v2079_v6 = vld [vmem:[%s672_s2] ss:$0 sm:$0xff] }
 0xc3a   : > { %v1442_v9 = vpop.f32.mrb[26].mxu1  ;;  %v2080_v8 = vld [vmem:[%s680_s29] ss:$0 sm:$0xff] }
 0xc3b   : > { %v2198_v10 = vpop.f32.mrb[27].mxu1  ;;  %2202 = vmatmul.mubr.msk.bf16.vlgmr.msra.gmra.mrb[20].mxu0 %vm842_vm4, %v1445_v7 }
 0xc3c   : > { %2221 = vmatprep.mubr.msk.bf16.mxu0 %vm2914_vm1, %v2913_v2  ;;  %2214 = vmatpush3.bf16.msra.mxu0 %v2400_v36 }
 0xc3d   : > { %2215 = vmatprep.subr.bf16.mxu0 %v2913_v2 }
 0xc40   : > { %2216 = vmatpush3.bf16.msra.mxu0 %v2401_v37 }
 0xc41   : > { %2217 = vmatprep.subr.bf16.mxu0 %v2913_v2 }
 0xc44   : > { %2218 = vmatpush3.bf16.msra.mxu0 %v2402_v38 }
 0xc45   : > { %2219 = vmatprep.subr.bf16.mxu0 %v2913_v2  ;;  %v2073_v2 = vld [vmem:[%s664_s10] ss:$0 sm:$0xff] }
 0xc48   : > { %2220 = vmatpush3.bf16.msra.mxu0 %v2403_v39 }
 0xd0e   : > { %v1488_v11 = vpop.f32.mrb[20].mxu0 }
 0xd0f   : > { %v1495_v13 = vadd.f32 %v1494_v12, %v1488_v11  ;;  %v2203_v14 = vpop.f32.mrb[21].mxu0 }
 0xd10   : > { %v1491_v15 = vpop.f32.mrb[22].mxu0 }
 0xd11   : > { %1496 = vst.msk [vmem:[#allocation4] sm:$0xff] %vm789_vm2, %v1495_v13  ;;  %v2204_v16 = vpop.f32.mrb[23].mxu0 }
 0xd18   : > { %v1497_v17 = vld [vmem:[#allocation4] sm:$0xff] }
 0xd19   : > { %v1498_v18 = vadd.f32 %v1497_v17, %v3561_v4 }
 0xd1b   : > { %v1499_v19 = vsel %vm789_vm2, %v1498_v18, 0.0 }
 0xd1c   : > { %1500 = vadd.xlane.f32.xlu0 %v1499_v19 }
 0xda9   : > { %v1501_v20 = vpop.xlane.xlu0 %1500 }
 0xdaa   : > { %v1503_v21 = vmul.f32 0.03125, %v1501_v20 }
 0xdac   : > { %v1504_v22 = vsub.f32 %v1498_v18, %v1503_v21 }
 0xdae   : > { %v1505_v23 = vmul.f32 %v1504_v22, %v1504_v22 }
 0xdb0   : > { %v1506_v24 = vsel %vm789_vm2, %v1505_v23, 0.0 }
 0xdb1   : > { %1507 = vadd.xlane.f32.xlu1 %v1506_v24 }
 0xe3e   : > { %v1508_v4 = vpop.xlane.xlu1 %1507 }
 0xe3f   : > { %v1509_v27 = vmul.f32 0.03125, %v1508_v4 }
 0xe41   : > { %v1510_v28 = vadd.f32 1e-05, %v1509_v27 }
 0xe43   : > { %2420 = vrsqrt.f32 %v1510_v28 }
 0xe4d   : > { %v2421_v29 = vpop.eup %2420 }
 0xe4e   : > { %v1512_v31 = vmul.f32 %v2421_v29, %v1504_v22 }
 0xe50   : > { %v1520_v33 = vmul.f32 %v2067_v30, %v1512_v31 }
 0xe52   : > { %v1528_v34 = vadd.f32 %v2068_v32, %v1520_v33 }
 0xe54   : > { %v1529_v35 = vpack.c.bf16 %v1528_v34, %v1528_v34 }
 0xe56   : > { %2210 = vmatmul.mubr.msk.bf16.vlgmr.msra.gmra.mrb[28].mxu1 %vm789_vm2, %v1529_v35 }
 0xf29   : > { %v1590_v41 = vpop.f32.mrb[28].mxu1 }
 0xf2a   : > { %v1591_v42 = vadd.f32 %v2069_v40, %v1590_v41  ;;  %v2211_v43 = vpop.f32.mrb[29].mxu1 }
 0xf2b   : > { %v1593_v44 = vpop.f32.mrb[30].mxu1 }
 0xf2c   : > { %v1597_v45 = vmul.f32 0.70710677, %v1591_v42  ;;  %v2212_v46 = vpop.f32.mrb[31].mxu1  ;;  %v1596_v48 = vmul.f32 0.5, %v1591_v42 }
 0xf2e   : > { %2422 = verf.f32 %v1597_v45 }
 0xf38   : > { %v2423_v47 = vpop.eup %2422 }
 0xf39   : > { %v1599_v49 = vadd.f32 1.0, %v2423_v47 }
 0xf3b   : > { %v1600_v50 = vmul.f32 %v1599_v49, %v1596_v48 }
 0xf3d   : > { %v1601_v51 = vpack.c.bf16 %v1600_v50, %v1600_v50 }
 0xf3f   : > { %2222 = vmatmul.mubr.msk.bf16.vlgmr.msra.gmra.mrb[24].mxu0 %vm1641_vm6, %v1601_v51 }
0x1012   : > { %v1679_v52 = vpop.f32.mrb[24].mxu0 }
0x1013   : > { %v1680_v53 = vadd.f32 %v2073_v2, %v1679_v52  ;;  %v2223_v54 = vpop.f32.mrb[25].mxu0 }
0x1014   : > { %v1682_v55 = vpop.f32.mrb[26].mxu0 }
0x1015   : > { %v2224_v56 = vpop.f32.mrb[27].mxu0  ;;  %v1685_v57 = vadd.f32 %v1680_v53, %v1528_v34 }
0x1017   : > { %v1686_v58 = vsel %vm789_vm2, %v1685_v57, 0.0 }
0x1018   : > { %1687 = vadd.xlane.f32.xlu1 %v1686_v58 }
0x10a5   : > { %v1688_v59 = vpop.xlane.xlu1 %1687 }
0x10a6   : > { %v1689_v60 = vmul.f32 0.03125, %v1688_v59 }
0x10a8   : > { %v1690_v61 = vsub.f32 %v1685_v57, %v1689_v60 }
0x10aa   : > { %v1691_v62 = vmul.f32 %v1690_v61, %v1690_v61 }
0x10ac   : > { %v1692_v63 = vsel %vm789_vm2, %v1691_v62, 0.0 }
0x10ad   : > { %1693 = vadd.xlane.f32.xlu1 %v1692_v63 }
0x113a   : > { %v1694_v0 = vpop.xlane.xlu1 %1693 }
0x113b   : > { %v1695_v1 = vmul.f32 0.03125, %v1694_v0 }
0x113d   : > { %v1696_v3 = vadd.f32 1e-05, %v1695_v1 }
0x113f   : > { %2424 = vrsqrt.f32 %v1696_v3 }
0x1149   : > { %v2425_v5 = vpop.eup %2424 }
0x114a   : > { %v1698_v7 = vmul.f32 %v2425_v5, %v1690_v61  ;;  %1719 = sbr.rel (%p2081_p3) target bundleno = 4433 (0x1151), region = 116 }
0x114c   : > { %v1706_v9 = vmul.f32 %v2079_v6, %v1698_v7 }
0x114e   : > { %v1714_v10 = vadd.f32 %v2080_v8, %v1706_v9 }
0x1150   : > { %1715 = vst.msk [vmem:[#allocation2] sm:$0xff] %vm789_vm2, %v1714_v10  ;;  %1720 = vst.msk [vmem:[%s3549_s23] sm:$0xff] (!%p2081_p3), %vm789_vm2, %v1714_v10 }
0x1151 PF: > { %s3859_s5 = sld [smem:[#allocation34_spill]]  ;;  %s3860_s28 = sld [smem:[#allocation54_spill]] }
0x1152   : > { %s1735_s2 = sshll.u32 %s3549_s23, 4  ;;  %s1722_s29 = scalar_lea.sflag [#allocation7], %s3494_s13  ;;  %s1736_s2 = int_to_ptr.vmem [resolvable:$true] %s1735_s2 }
0x1153   : > { %s2756_s24 = scalar_lea.vmem %s1736_s2, 128  ;;  %p3861_p1 = scmp.ne.s32.totalorder %s3829_s4, 0 }
0x1154   : > { %p2757_p11 = scmp.ne.s32.totalorder %s1736_s2, %s2756_s24  ;;  %s2926_s26 = smov [#allocation23]  }
0x1155   : > { %s2760_s3 = sshll.u32 %s2926_s26, 4  ;;  %s2761_s3 = int_to_ptr.vmem [resolvable:$false] %s2760_s3 }
0x1156   : > { %p2758_p13 = pnand %p2757_p11, %p3861_p1  ;;  %s2762_s19 = scalar_lea.vmem %s2761_s3, 256 }
0x1157   : > { %s2083_s11 = sshll.u32 %s3859_s5, 7  ;;  %p2763_p0 = scmp.lt.s32.totalorder %s1736_s2, %s2761_s3 }
0x1158   : > { %s3686_s10 = scalar_lea.hbm %s3860_s28, %s2083_s11  ;;  %p2759_p10 = pneg %p2758_p13 }
0x1159   : > { %p2764_p7 = scmp.lt.s32.totalorder %s2762_s19, %s2756_s24 }
0x115b   : > { %p2765_p9 = por %p2764_p7, %p2763_p0 }
0x115d   : > { %p2766_p2 = pnand %p2765_p9, %p2759_p10 }
0x115f   : > { %2769 = shalt.err (!%p2766_p2)
}
0x1160   : > { %s2770_s13 = scalar_lea.hbm %s3686_s10, 128  ;;  %s2774_s16 = scalar_lea.hbm %s3860_s28, 256 }
0x1161   : > { %p2771_p12 = scmp.ne.s32.totalorder %s3686_s10, %s2770_s13  ;;  %p2775_p4 = scmp.lt.u32.totalorder %s3686_s10, %s3860_s28 }
0x1162   : > { %p2776_p8 = scmp.lt.u32.totalorder %s2774_s16, %s2770_s13  ;;  %p2778_p11 = scmp.lt.u32.totalorder %s2770_s13, %s3686_s10 }
0x1163   : > { %p2772_p5 = pnand %p2771_p12, %p3861_p1 }
0x1164   : > { %p2777_p3 = por %p2776_p8, %p2775_p4 }
0x1165   : > { %p2773_p6 = pneg %p2772_p5 }
0x1166   : > { %p2779_p13 = por %p2778_p11, %p2777_p3 }
0x1168   : > { %p2780_p10 = pnand %p2779_p13, %p2773_p6 }
0x116a   : > { %2783 = shalt.err (!%p2780_p10)
}
0x116b   : > { %2247 = dma.vmem_to_hbm [thread:$0]  (%p3861_p1), %s1736_s2, 128, %s3686_s10, %s1722_s29  }
0x116c PF: > { %p2288_p0 = scmp.ge.s32.totalorder %s2898_s27, 2  ;;  %s1747_s22 = sand.u32 1, %s2870_s20  }
0x116d   : > { %p3862_p7 = scmp.ne.s32.totalorder %s3830_s17, 0  ;;  %s1748_s30 = scalar_lea.sflag [#allocation7], %s1747_s22 }
0x116f   : > { %p2284_p9 = pnand %p2288_p0, %p3862_p7 }
0x1171   : > { %2853 = dma.done.wait (!%p2284_p9), %s1748_s30, 128  }
0x1172   : > { %2855 = vsyncadd (!%p2284_p9), %s1748_s30, 4294967168  ;;  %s42_s27 = sadd.s32 1, %s2898_s27   ;;  %s3863_s5 = sld [smem:[#allocation31_spill]] }
0x1173   : > { %p39_p2 = scmp.ge.s32.totalorder %s42_s27, 6   ;;  %s3864_s19 = sld [smem:[#allocation41_spill]] }
0x1174   : > { %s3865_s4 = sld [smem:[#allocation32_spill]]  ;;  %s3866_s22 = sld [smem:[#allocation42_spill]] }
0x1175   : > { %s3867_s23 = sld [smem:[#allocation35_spill]]  ;;  %s3868_s24 = sld [smem:[#allocation36_spill]] }
0x1176   : > { %s3869_s25 = sld [smem:[#allocation39_spill]]  ;;  %s3870_s26 = sld [smem:[#allocation40_spill]] }
0x1177   : > { %s3871_s17 = smov %s2862_s18  ;;  %s3873_s20 = smov %s2874_s21 }
0x1178   : > { %s3872_s18 = smov %s3863_s5  ;;  %41 = sbr.rel (!%p39_p2) target bundleno = 32 (0x20), region = 240 }
0x117a   : > { %s3874_s21 = smov %s3865_s4 }
0x117f   :  { %1753 = vsyncpa [#allocation6], 1 }
0x1180   :  { %1755 = vsyncpa [#allocation6 + $0x1], 1 }
0x1181   :  { %1756 = vsyncpa [#allocation9], 1 }
0x1182   :  { %1758 = vsyncpa [#allocation9 + $0x1], 1 }
0x1183   :  { %1759 = vsyncpa [#allocation12], 1 }
0x1184   :  { %1761 = vsyncpa [#allocation12 + $0x1], 1 }
0x1185   :  { %1762 = vsyncpa [#allocation15], 1 }
0x1186   :  { %1764 = vsyncpa [#allocation15 + $0x1], 1 }
0x1187   :  { %1765 = vsyncpa [#allocation18], 1 }
0x1188   :  { %1767 = vsyncpa [#allocation18 + $0x1], 1 }
0x1189   :  { %1768 = vsyncpa [#allocation21], 1 }
0x118a   :  { %1770 = vsyncpa [#allocation21 + $0x1], 1 }
0x118b   :  { %1771 = vsyncpa [#allocation7], 1 }
0x118c   :  { %1773 = vsyncpa [#allocation7 + $0x1], 1 }

</bundles_post_ra>
